<compile_context>
chip_gen: v5e
topology: v5e:2x2
jax: 0.10.0
libtpu: 0.0.40
codegen_flags: <defaults>
</compile_context>

<pallas_src>
import functools
import math

import jax
import jax.numpy as jnp
from jax.experimental import pallas as pl
from jax.experimental.pallas import tpu as pltpu

_LANE = 128
_SUBLANE = 8


# --------------------------------------------------------------------------
# kernels
# --------------------------------------------------------------------------
def _quat_rotate_cm_kernel(v_ref, q_ref, o_ref):
    """Component-major path.  q_ref: (4, R, 128), v_ref/o_ref: (3, R, 128)."""
    f32 = jnp.float32
    qw = q_ref[0].astype(f32)
    qx = q_ref[1].astype(f32)
    qy = q_ref[2].astype(f32)
    qz = q_ref[3].astype(f32)
    vx = v_ref[0].astype(f32)
    vy = v_ref[1].astype(f32)
    vz = v_ref[2].astype(f32)

    # (q ⊗ (0,v) ⊗ conj(q))_vec = (qw^2 - |qv|^2) v + 2 (qv.v) qv + 2 qw (qv x v)
    # (exact for non-unit quaternions; vec.w cancels in the vector part).
    s = qw * qw - (qx * qx + qy * qy + qz * qz)
    d2 = 2.0 * (qx * vx + qy * vy + qz * vz)
    w2 = 2.0 * qw

    dt = o_ref.dtype
    o_ref[0] = (s * vx + d2 * qx + w2 * (qy * vz - qz * vy)).astype(dt)
    o_ref[1] = (s * vy + d2 * qy + w2 * (qz * vx - qx * vz)).astype(dt)
    o_ref[2] = (s * vz + d2 * qz + w2 * (qx * vy - qy * vx)).astype(dt)


def _quat_rotate_fused_kernel(v_ref, q_ref, dq_ref, dv_ref, ro_ref, o_ref):
    """Fused AoS path.

    v_ref, q_ref : (R, 512)  natural interleaved (w,x,y,z) * 128 per row
    dq_ref       : (512, 512) 0/1 de-interleave matrix -> [qw|qx|qy|qz]
    dv_ref       : (512, 384) 0/1 de-interleave matrix -> [vx|vy|vz]
    ro_ref       : (3, 128, 384) 0/1 re-interleave matrices (x, y, z)
    o_ref        : (R, 384)  natural interleaved (x,y,z) * 128 per row
    """
    f32 = jnp.float32
    cdt = dq_ref.dtype  # bf16 for pure-bf16 inputs (1-pass, exact), else f32

    q = q_ref[...].astype(cdt)
    v = v_ref[...].astype(cdt)

    # De-interleave on the (otherwise idle) MXU.  Each output element is a
    # sum with exactly one nonzero (1.0 * value) term -> exact selection.
    qd = jnp.dot(q, dq_ref[...], preferred_element_type=f32)  # (R, 512)
    vd = jnp.dot(v, dv_ref[...], preferred_element_type=f32)  # (R, 384)

    qw = qd[:, 0 * _LANE:1 * _LANE]
    qx = qd[:, 1 * _LANE:2 * _LANE]
    qy = qd[:, 2 * _LANE:3 * _LANE]
    qz = qd[:, 3 * _LANE:4 * _LANE]
    vx = vd[:, 0 * _LANE:1 * _LANE]
    vy = vd[:, 1 * _LANE:2 * _LANE]
    vz = vd[:, 2 * _LANE:3 * _LANE]

    s = qw * qw - (qx * qx + qy * qy + qz * qz)
    d2 = 2.0 * (qx * vx + qy * vy + qz * vz)
    w2 = 2.0 * qw

    ox = s * vx + d2 * qx + w2 * (qy * vz - qz * vy)
    oy = s * vy + d2 * qy + w2 * (qz * vx - qx * vz)
    oz = s * vz + d2 * qz + w2 * (qx * vy - qy * vx)

    # Re-interleave directly into the natural (..., 3) layout: column 3*j + c.
    odt = ro_ref.dtype
    out = (jnp.dot(ox.astype(odt), ro_ref[0], preferred_element_type=f32)
           + jnp.dot(oy.astype(odt), ro_ref[1], preferred_element_type=f32)
           + jnp.dot(oz.astype(odt), ro_ref[2], preferred_element_type=f32))
    o_ref[...] = out.astype(o_ref.dtype)


# --------------------------------------------------------------------------
# helpers
# --------------------------------------------------------------------------
def _round_up(x, m):
    return ((x + m - 1) // m) * m


def _row_align(dtype):
    """Sublane multiple for packed dtypes: 8 (f32), 16 (bf16/f16), 32 (int8)."""
    itemsize = jnp.dtype(dtype).itemsize
    return _SUBLANE * max(1, 4 // itemsize)


def _selection_matrices(sel_in_dtype, sel_out_dtype):
    """0/1 (de)interleave matrices (constant-folded by XLA)."""
    k = jnp.arange(4 * _LANE, dtype=jnp.int32)[:, None]
    nq = jnp.arange(4 * _LANE, dtype=jnp.int32)[None, :]
    dq = (k == 4 * (nq % _LANE) + nq // _LANE).astype(sel_in_dtype)
    nv = jnp.arange(3 * _LANE, dtype=jnp.int32)[None, :]
    dv = (k == 4 * (nv % _LANE) + (nv // _LANE + 1)).astype(sel_in_dtype)
    c = jnp.arange(3, dtype=jnp.int32)[:, None, None]
    j = jnp.arange(_LANE, dtype=jnp.int32)[None, :, None]
    n = jnp.arange(3 * _LANE, dtype=jnp.int32)[None, None, :]
    ro = (n == 3 * j + c).astype(sel_out_dtype)
    return dq, dv, ro


# --------------------------------------------------------------------------
# wrapper
# --------------------------------------------------------------------------
@functools.partial(
    jax.jit,
    static_argnames=("strategy", "block_rows_target", "force_even_steps",
                     "vmem_limit_bytes"))
def _quat_rotate_impl(vec, quat, *, strategy, block_rows_target,
                      force_even_steps, vmem_limit_bytes):
    if vec.shape != quat.shape:
        # TODO(synk): broadcast-quat fast path — pass the un-expanded quat and
        # repeat it via the BlockSpec index_map (or keep it resident in VMEM)
        # instead of materializing the broadcast.
        vec, quat = jnp.broadcast_arrays(vec, quat)
    orig_shape = vec.shape
    assert orig_shape[-1] == 4, "last dim must be the quaternion axis (=4)"

    out_dtype = jnp.result_type(vec.dtype, quat.dtype)
    if out_dtype not in (jnp.dtype(jnp.float32), jnp.dtype(jnp.bfloat16),
                         jnp.dtype(jnp.float16)):
        out_dtype = jnp.dtype(jnp.float32)  # int / f64 inputs -> f32 output

    m = math.prod(orig_shape[:-1]) if len(orig_shape) > 1 else 1

    # ---- tiling: 128-quaternion lane rows, dtype-aware sublane alignment ----
    row_align = max(_row_align(vec.dtype), _row_align(quat.dtype),
                    _row_align(out_dtype))
    quantum = row_align * _LANE                       # quats per minimal tile slab
    m_pad = _round_up(max(m, 1), quantum)
    rows = m_pad // _LANE

    block_rows = min(_round_up(rows, row_align),
                     _round_up(block_rows_target, row_align))
    n_steps = -(-rows // block_rows)
    if force_even_steps:                              # v7x: 2 TensorCores
        if n_steps == 1 and rows > row_align:
            n_steps = 2
        if n_steps > 1 and (n_steps % 2) == 1:
            n_steps += 1
        block_rows = min(block_rows,
                         _round_up(-(-rows // n_steps), row_align))
        n_steps = -(-rows // block_rows)

    compiler_params = pltpu.CompilerParams(
        dimension_semantics=("parallel",),
        vmem_limit_bytes=vmem_limit_bytes,
    )

    if strategy == "fused":
        # ---- natural AoS layout, free reshape (m,4) -> (rows, 512) ----------
        v2 = jnp.reshape(vec, (m, 4))
        q2 = jnp.reshape(quat, (m, 4))
        if m_pad != m:  # only when the element count is not 128*sublane aligned
            v2 = jnp.pad(v2, ((0, m_pad - m), (0, 0)))
            q2 = jnp.pad(q2, ((0, m_pad - m), (0, 0)))
        v4 = jnp.reshape(v2, (rows, 4 * _LANE))       # free reshape
        q4 = jnp.reshape(q2, (rows, 4 * _LANE))       # free reshape

        both_bf16 = (vec.dtype == jnp.dtype(jnp.bfloat16)
                     and quat.dtype == jnp.dtype(jnp.bfloat16))
        sel_in = jnp.bfloat16 if both_bf16 else jnp.float32
        sel_out = jnp.bfloat16 if out_dtype == jnp.dtype(jnp.bfloat16) else jnp.float32
        dq, dv, ro = _selection_matrices(sel_in, sel_out)

        out = pl.pallas_call(
            _quat_rotate_fused_kernel,
            out_shape=jax.ShapeDtypeStruct((rows, 3 * _LANE), out_dtype),
            grid_spec=pltpu.PrefetchScalarGridSpec(
                num_scalar_prefetch=0,
                grid=(n_steps,),
                in_specs=[
                    pl.BlockSpec((block_rows, 4 * _LANE), lambda i: (i, 0)),
                    pl.BlockSpec((block_rows, 4 * _LANE), lambda i: (i, 0)),
                    pl.BlockSpec((4 * _LANE, 4 * _LANE), lambda i: (0, 0)),
                    pl.BlockSpec((4 * _LANE, 3 * _LANE), lambda i: (0, 0)),
                    pl.BlockSpec((3, _LANE, 3 * _LANE), lambda i: (0, 0, 0)),
                ],
                out_specs=pl.BlockSpec((block_rows, 3 * _LANE),
                                       lambda i: (i, 0)),
            ),
            compiler_params=compiler_params,
        )(v4, q4, dq, dv, ro)

        out = jnp.reshape(out, (m_pad, 3))            # free reshape
        if m_pad != m:
            out = out[:m]
        return jnp.reshape(out, orig_shape[:-1] + (3,))

    # ---- component-major fallback (older single-TC parts, f32 inputs) -------
    q2 = jnp.reshape(quat, (m, 4)).T                  # (4, M)
    v2 = jnp.reshape(vec, (m, 4))[:, 1:4].T           # (3, M); vec.w never needed
    if m_pad != m:
        q2 = jnp.pad(q2, ((0, 0), (0, m_pad - m)))
        v2 = jnp.pad(v2, ((0, 0), (0, m_pad - m)))
    q3 = jnp.reshape(q2, (4, rows, _LANE))
    v3 = jnp.reshape(v2, (3, rows, _LANE))

    out = pl.pallas_call(
        _quat_rotate_cm_kernel,
        out_shape=jax.ShapeDtypeStruct((3, rows, _LANE), out_dtype),
        grid_spec=pltpu.PrefetchScalarGridSpec(
            num_scalar_prefetch=0,
            grid=(n_steps,),
            in_specs=[
                pl.BlockSpec((3, block_rows, _LANE), lambda i: (0, i, 0)),
                pl.BlockSpec((4, block_rows, _LANE), lambda i: (0, i, 0)),
            ],
            out_specs=pl.BlockSpec((3, block_rows, _LANE), lambda i: (0, i, 0)),
        ),
        compiler_params=compiler_params,
    )(v3, q3)

    out = jnp.reshape(out, (3, m_pad))[:, :m].T       # (M, 3)
    return jnp.reshape(out, orig_shape[:-1] + (3,))


def quat_rotate(vec, quat, *, strategy=None, block_rows_target=None):
    """vec, quat: (..., 4). Returns (..., 3) = (quat ⊗ vec ⊗ conj(quat))[..., 1:4]."""
    kind = jax.devices()[0].device_kind.replace(" ", "").lower()
    old_gen = any(t in kind for t in ("v2", "v3", "v4", "v5"))   # single TC, small MXU
    is_v6 = ("v6" in kind) or ("tpu6" in kind)
    multi_tc = ("v7" in kind) or ("tpu7" in kind)

    in_dtype = jnp.result_type(vec.dtype, quat.dtype)
    if strategy is None:
        # bf16 selection matmuls are 1-pass (free) on every generation; f32
        # selection on old small-MXU parts is not, so keep component-major there.
        if in_dtype == jnp.dtype(jnp.bfloat16) or not old_gen:
            strategy = "fused"
        else:
            strategy = "component_major"
    assert strategy in ("fused", "component_major")

    if block_rows_target is None:
        if strategy == "fused":
            block_rows_target = 1024 if old_gen else (2048 if is_v6 else 1536)
        else:
            block_rows_target = 1024 if old_gen else 2048

    # v5e/v6e have 128 MiB physical VMEM; v7x only 64 MiB -> stay conservative.
    vmem_limit = (96 if (old_gen or is_v6) else 48) * 1024 * 1024

    return _quat_rotate_impl(
        vec, quat,
        strategy=strategy,
        block_rows_target=int(block_rows_target),
        force_even_steps=bool(multi_tc),
        vmem_limit_bytes=int(vmem_limit),
    )


# --------------------------------------------------------------------------
# pure-JAX reference (mirrors the PyTorch module: double Hamilton product)
# --------------------------------------------------------------------------
def _quat_rotate_ref(vec, quat):
    vec, quat = jnp.broadcast_arrays(vec, quat)

    def hamilton(q1, q2):
        w1, x1, y1, z1 = (q1[..., i] for i in range(4))
        w2, x2, y2, z2 = (q2[..., i] for i in range(4))
        return jnp.stack(
            [
                w1 * w2 - x1 * x2 - y1 * y2 - z1 * z2,
                w1 * x2 + x1 * w2 + y1 * z2 - z1 * y2,
                w1 * y2 - x1 * z2 + y1 * w2 + z1 * x2,
                w1 * z2 + x1 * y2 - y1 * x2 + z1 * w2,
            ],
            axis=-1,
        )

    conj = jnp.concatenate([quat[..., :1], -quat[..., 1:]], axis=-1)
    mult = hamilton(hamilton(quat, vec), conj)
    return mult[..., 1:4]


# --------------------------------------------------------------------------
# self-test
# --------------------------------------------------------------------------
if __name__ == "__main__":
    key = jax.random.PRNGKey(0)
    k1, k2 = jax.random.split(key)

    # Case 1: small 4-D shape (dim-3 = quaternion axis), unit quats, f32.
    B, N, K = 2, 4, 8
    vec = jax.random.normal(k1, (B, N, K, 4), dtype=jnp.float32)
    quat = jax.random.normal(k2, (B, N, K, 4), dtype=jnp.float32)
    quat = quat / jnp.linalg.norm(quat, axis=-1, keepdims=True)
    ref = _quat_rotate_ref(vec, quat)
    for strat in ("fused", "component_major"):
        out = jax.block_until_ready(quat_rotate(vec, quat, strategy=strat))
        assert out.shape == (B, N, K, 3), (strat, out.shape)
        assert jnp.allclose(out, ref, atol=1e-4, rtol=1e-4), f"mismatch ({strat}, case 1)"

    # Case 2: element count not a multiple of 128 (ragged tail), non-unit quats.
    B2, N2, K2 = 2, 3, 50
    vec2 = jax.random.normal(k1, (B2, N2, K2, 4), dtype=jnp.float32)
    quat2 = jax.random.normal(k2, (B2, N2, K2, 4), dtype=jnp.float32)
    ref2 = _quat_rotate_ref(vec2, quat2)
    for strat in ("fused", "component_major"):
        out2 = jax.block_until_ready(quat_rotate(vec2, quat2, strategy=strat))
        assert out2.shape == (B2, N2, K2, 3), (strat, out2.shape)
        assert jnp.allclose(out2, ref2, atol=1e-4, rtol=1e-4), f"mismatch ({strat}, case 2)"

    # Case 3: bf16 inputs (packed-sublane alignment + 1-pass bf16 selection path).
    B3, N3, K3 = 2, 16, 32
    vec3 = jax.random.normal(k1, (B3, N3, K3, 4), dtype=jnp.float32)
    quat3 = jax.random.normal(k2, (B3, N3, K3, 4), dtype=jnp.float32)
    quat3 = quat3 / jnp.linalg.norm(quat3, axis=-1, keepdims=True)
    vec3_b = vec3.astype(jnp.bfloat16)
    quat3_b = quat3.astype(jnp.bfloat16)
    ref3 = _quat_rotate_ref(vec3_b.astype(jnp.float32), quat3_b.astype(jnp.float32))
    out3 = jax.block_until_ready(quat_rotate(vec3_b, quat3_b))
    assert out3.shape == (B3, N3, K3, 3), out3.shape
    assert out3.dtype == jnp.dtype(jnp.bfloat16), out3.dtype
    assert jnp.allclose(out3.astype(jnp.float32), ref3, atol=1e-1, rtol=1e-1), "mismatch (bf16)"

    print("KERNEL_OK")
</pallas_src>

<mosaic_0001>
module attributes {stable_mosaic.version = 11 : i64} {
  func.func @_quat_rotate_fused_kernel(%arg0: i32, %arg1: memref<8x512xf32, #tpu.memory_space<vmem>>, %arg2: memref<8x512xf32, #tpu.memory_space<vmem>>, %arg3: memref<512x512xf32, #tpu.memory_space<vmem>>, %arg4: memref<512x384xf32, #tpu.memory_space<vmem>>, %arg5: memref<3x128x384xf32, #tpu.memory_space<vmem>>, %arg6: memref<8x384xf32, #tpu.memory_space<vmem>>) attributes {dimension_semantics = [#tpu.dimension_semantics<parallel>], iteration_bounds = array<i64: 1>, scalar_prefetch = 0 : i64, scratch_operands = 0 : i64, tpu.core_type = #tpu.core_type<tc>, window_params = [{transform_indices = @transform_0, window_bounds = array<i64: 8, 512>}, {transform_indices = @transform_1, window_bounds = array<i64: 8, 512>}, {pipeline_mode = #tpu.pipeline_mode<synchronous>, transform_indices = @transform_2, window_bounds = array<i64: 512, 512>}, {pipeline_mode = #tpu.pipeline_mode<synchronous>, transform_indices = @transform_3, window_bounds = array<i64: 512, 384>}, {pipeline_mode = #tpu.pipeline_mode<synchronous>, transform_indices = @transform_4, window_bounds = array<i64: 3, 128, 384>}, {transform_indices = @transform_5, window_bounds = array<i64: 8, 384>}]} {
    %c0 = arith.constant 0 : index
    %c0_0 = arith.constant 0 : index
    %0 = vector.load %arg2[%c0, %c0_0] : memref<8x512xf32, #tpu.memory_space<vmem>>, vector<8x512xf32>
    %c0_1 = arith.constant 0 : index
    %c0_2 = arith.constant 0 : index
    %1 = vector.load %arg1[%c0_1, %c0_2] : memref<8x512xf32, #tpu.memory_space<vmem>>, vector<8x512xf32>
    %c0_3 = arith.constant 0 : index
    %c0_4 = arith.constant 0 : index
    %2 = vector.load %arg3[%c0_3, %c0_4] : memref<512x512xf32, #tpu.memory_space<vmem>>, vector<512x512xf32>
    %cst = arith.constant dense<0.000000e+00> : vector<8x512xf32>
    %3 = tpu.matmul %0, %2, %cst {dimension_numbers = #tpu.dot_dimension_numbers<[1], [0], [0], [1], [0, 0, 1, 1], [], []>} : vector<8x512xf32>, vector<512x512xf32>, vector<8x512xf32> -> vector<8x512xf32>
    %c0_5 = arith.constant 0 : index
    %c0_6 = arith.constant 0 : index
    %4 = vector.load %arg4[%c0_5, %c0_6] : memref<512x384xf32, #tpu.memory_space<vmem>>, vector<512x384xf32>
    %cst_7 = arith.constant dense<0.000000e+00> : vector<8x384xf32>
    %5 = tpu.matmul %1, %4, %cst_7 {dimension_numbers = #tpu.dot_dimension_numbers<[1], [0], [0], [1], [0, 0, 1, 1], [], []>} : vector<8x512xf32>, vector<512x384xf32>, vector<8x384xf32> -> vector<8x384xf32>
    %6 = vector.extract_strided_slice %3 {offsets = [0, 0], sizes = [8, 128], strides = [1, 1]} : vector<8x512xf32> to vector<8x128xf32>
    %7 = vector.extract_strided_slice %3 {offsets = [0, 128], sizes = [8, 128], strides = [1, 1]} : vector<8x512xf32> to vector<8x128xf32>
    %8 = vector.extract_strided_slice %3 {offsets = [0, 256], sizes = [8, 128], strides = [1, 1]} : vector<8x512xf32> to vector<8x128xf32>
    %9 = vector.extract_strided_slice %3 {offsets = [0, 384], sizes = [8, 128], strides = [1, 1]} : vector<8x512xf32> to vector<8x128xf32>
    %10 = vector.extract_strided_slice %5 {offsets = [0, 0], sizes = [8, 128], strides = [1, 1]} : vector<8x384xf32> to vector<8x128xf32>
    %11 = vector.extract_strided_slice %5 {offsets = [0, 128], sizes = [8, 128], strides = [1, 1]} : vector<8x384xf32> to vector<8x128xf32>
    %12 = vector.extract_strided_slice %5 {offsets = [0, 256], sizes = [8, 128], strides = [1, 1]} : vector<8x384xf32> to vector<8x128xf32>
    %13 = arith.mulf %6, %6 : vector<8x128xf32>
    %14 = arith.mulf %7, %7 : vector<8x128xf32>
    %15 = arith.mulf %8, %8 : vector<8x128xf32>
    %16 = arith.addf %14, %15 : vector<8x128xf32>
    %17 = arith.mulf %9, %9 : vector<8x128xf32>
    %18 = arith.addf %16, %17 : vector<8x128xf32>
    %19 = arith.subf %13, %18 : vector<8x128xf32>
    %20 = arith.mulf %7, %10 : vector<8x128xf32>
    %21 = arith.mulf %8, %11 : vector<8x128xf32>
    %22 = arith.addf %20, %21 : vector<8x128xf32>
    %23 = arith.mulf %9, %12 : vector<8x128xf32>
    %24 = arith.addf %22, %23 : vector<8x128xf32>
    %cst_8 = arith.constant 2.000000e+00 : f32
    %25 = vector.broadcast %cst_8 : f32 to vector<8x128xf32>
    %26 = arith.mulf %25, %24 : vector<8x128xf32>
    %cst_9 = arith.constant 2.000000e+00 : f32
    %27 = vector.broadcast %cst_9 : f32 to vector<8x128xf32>
    %28 = arith.mulf %27, %6 : vector<8x128xf32>
    %29 = arith.mulf %19, %10 : vector<8x128xf32>
    %30 = arith.mulf %26, %7 : vector<8x128xf32>
    %31 = arith.addf %29, %30 : vector<8x128xf32>
    %32 = arith.mulf %8, %12 : vector<8x128xf32>
    %33 = arith.mulf %9, %11 : vector<8x128xf32>
    %34 = arith.subf %32, %33 : vector<8x128xf32>
    %35 = arith.mulf %28, %34 : vector<8x128xf32>
    %36 = arith.addf %31, %35 : vector<8x128xf32>
    %37 = arith.mulf %19, %11 : vector<8x128xf32>
    %38 = arith.mulf %26, %8 : vector<8x128xf32>
    %39 = arith.addf %37, %38 : vector<8x128xf32>
    %40 = arith.mulf %9, %10 : vector<8x128xf32>
    %41 = arith.mulf %7, %12 : vector<8x128xf32>
    %42 = arith.subf %40, %41 : vector<8x128xf32>
    %43 = arith.mulf %28, %42 : vector<8x128xf32>
    %44 = arith.addf %39, %43 : vector<8x128xf32>
    %45 = arith.mulf %19, %12 : vector<8x128xf32>
    %46 = arith.mulf %26, %9 : vector<8x128xf32>
    %47 = arith.addf %45, %46 : vector<8x128xf32>
    %48 = arith.mulf %7, %11 : vector<8x128xf32>
    %49 = arith.mulf %8, %10 : vector<8x128xf32>
    %50 = arith.subf %48, %49 : vector<8x128xf32>
    %51 = arith.mulf %28, %50 : vector<8x128xf32>
    %52 = arith.addf %47, %51 : vector<8x128xf32>
    %c0_10 = arith.constant 0 : index
    %c0_11 = arith.constant 0 : index
    %c0_12 = arith.constant 0 : index
    %53 = vector.load %arg5[%c0_10, %c0_11, %c0_12] : memref<3x128x384xf32, #tpu.memory_space<vmem>>, vector<1x128x384xf32>
    %54 = vector.shape_cast %53 : vector<1x128x384xf32> to vector<128x384xf32>
    %cst_13 = arith.constant dense<0.000000e+00> : vector<8x384xf32>
    %55 = tpu.matmul %36, %54, %cst_13 {dimension_numbers = #tpu.dot_dimension_numbers<[1], [0], [0], [1], [0, 0, 1, 1], [], []>} : vector<8x128xf32>, vector<128x384xf32>, vector<8x384xf32> -> vector<8x384xf32>
    %c1 = arith.constant 1 : index
    %c0_14 = arith.constant 0 : index
    %c0_15 = arith.constant 0 : index
    %56 = vector.load %arg5[%c1, %c0_14, %c0_15] : memref<3x128x384xf32, #tpu.memory_space<vmem>>, vector<1x128x384xf32>
    %57 = vector.shape_cast %56 : vector<1x128x384xf32> to vector<128x384xf32>
    %cst_16 = arith.constant dense<0.000000e+00> : vector<8x384xf32>
    %58 = tpu.matmul %44, %57, %cst_16 {dimension_numbers = #tpu.dot_dimension_numbers<[1], [0], [0], [1], [0, 0, 1, 1], [], []>} : vector<8x128xf32>, vector<128x384xf32>, vector<8x384xf32> -> vector<8x384xf32>
    %59 = arith.addf %55, %58 : vector<8x384xf32>
    %c2 = arith.constant 2 : index
    %c0_17 = arith.constant 0 : index
    %c0_18 = arith.constant 0 : index
    %60 = vector.load %arg5[%c2, %c0_17, %c0_18] : memref<3x128x384xf32, #tpu.memory_space<vmem>>, vector<1x128x384xf32>
    %61 = vector.shape_cast %60 : vector<1x128x384xf32> to vector<128x384xf32>
    %cst_19 = arith.constant dense<0.000000e+00> : vector<8x384xf32>
    %62 = tpu.matmul %52, %61, %cst_19 {dimension_numbers = #tpu.dot_dimension_numbers<[1], [0], [0], [1], [0, 0, 1, 1], [], []>} : vector<8x128xf32>, vector<128x384xf32>, vector<8x384xf32> -> vector<8x384xf32>
    %63 = arith.addf %59, %62 : vector<8x384xf32>
    %c0_20 = arith.constant 0 : index
    %c0_21 = arith.constant 0 : index
    %64 = vector.load %arg6[%c0_20, %c0_21] : memref<8x384xf32, #tpu.memory_space<vmem>>, vector<8x384xf32>
    tpu.vector_store %arg6[%c0_20, %c0_21], %63 {strides = array<i32>} : memref<8x384xf32, #tpu.memory_space<vmem>>, vector<8x384xf32>,
    return
  }
  func.func @transform_0(%arg0: i32) -> (i32, i32) {
    %c0_i32 = arith.constant 0 : i32
    %c0_i32_0 = arith.constant 0 : i32
    return %arg0, %c0_i32 : i32, i32
  }
  func.func @transform_1(%arg0: i32) -> (i32, i32) {
    %c0_i32 = arith.constant 0 : i32
    %c0_i32_0 = arith.constant 0 : i32
    return %arg0, %c0_i32 : i32, i32
  }
  func.func @transform_2(%arg0: i32) -> (i32, i32) {
    %c0_i32 = arith.constant 0 : i32
    %c0_i32_0 = arith.constant 0 : i32
    %c0_i32_1 = arith.constant 0 : i32
    return %c0_i32, %c0_i32_0 : i32, i32
  }
  func.func @transform_3(%arg0: i32) -> (i32, i32) {
    %c0_i32 = arith.constant 0 : i32
    %c0_i32_0 = arith.constant 0 : i32
    %c0_i32_1 = arith.constant 0 : i32
    return %c0_i32, %c0_i32_0 : i32, i32
  }
  func.func @transform_4(%arg0: i32) -> (i32, i32, i32) {
    %c0_i32 = arith.constant 0 : i32
    %c0_i32_0 = arith.constant 0 : i32
    %c0_i32_1 = arith.constant 0 : i32
    %c0_i32_2 = arith.constant 0 : i32
    return %c0_i32, %c0_i32_0, %c0_i32_1 : i32, i32, i32
  }
  func.func @transform_5(%arg0: i32) -> (i32, i32) {
    %c0_i32 = arith.constant 0 : i32
    %c0_i32_0 = arith.constant 0 : i32
    return %arg0, %c0_i32 : i32, i32
  }
}

</mosaic_0001>

<bundles_post_ra>
// kernel: _quat_rotate_impl.1
= control target key start
LH: loop header
LB: loop body
LE: loop exit
PB: predicated region body
PF: predicated region fallthrough
CT: control target
= control target key end

     0   :  { %s3437_s2 = inlined_call_operand.vmem [shape: f32[512,512], index: 2, kind: input, shape index: {}]   ;;  %s3438_s1 = inlined_call_operand.vmem [shape: f32[8,512], index: 1, kind: input, shape index: {}]   ;;  %s3439_s3 = inlined_call_operand.vmem [shape: f32[512,384], index: 3, kind: input, shape index: {}]   ;;  %s3440_s0 = inlined_call_operand.vmem [shape: f32[8,512], index: 0, kind: input, shape index: {}]   ;;  %s3441_s4 = inlined_call_operand.vmem [shape: f32[3,128,384], index: 4, kind: input, shape index: {}]   ;;  %s3442_s5 = inlined_call_operand.vmem [shape: f32[8,384], index: 5, kind: output, shape index: {}]  }
   0x1   :  { %v216_v0 = vld [vmem:[%s3437_s2 + $0x5e0] sm:$0xff]  ;;  %v217_v62 = vld [vmem:[%s3437_s2 + $0x5e8] sm:$0xff] }
   0x2   :  { %v212_v1 = vld [vmem:[%s3437_s2 + $0x5c0] sm:$0xff]  ;;  %324 = vmatpush.msra.mxu2 %v216_v0  ;;  %v281_v63 = vld [vmem:[%s3437_s2 + $0x7e8] sm:$0xff] }
   0x3   :  { %v280_v2 = vld [vmem:[%s3437_s2 + $0x7e0] sm:$0xff] }
   0x4   :  { %344 = vmatpush.msra.mxu3 %v280_v2  ;;  %v88_v3 = vld [vmem:[%s3437_s2 + $0x1e0] sm:$0xff]  ;;  %325 = vmatpush.msra.mxu2 %v212_v1  ;;  %v213_v2 = vld [vmem:[%s3437_s2 + $0x5c8] sm:$0xff] }
   0x5   :  { %v152_v4 = vld [vmem:[%s3437_s2 + $0x3e0] sm:$0xff]  ;;  %284 = vmatpush.msra.mxu0 %v88_v3  ;;  %v89_v3 = vld [vmem:[%s3437_s2 + $0x1e8] sm:$0xff] }
   0x6   :  { %v208_v5 = vld [vmem:[%s3437_s2 + $0x5a0] sm:$0xff]  ;;  %304 = vmatpush.msra.mxu1 %v152_v4  ;;  %v153_v4 = vld [vmem:[%s3437_s2 + $0x3e8] sm:$0xff] }
   0x7   :  { %v276_v6 = vld [vmem:[%s3437_s2 + $0x7c0] sm:$0xff]  ;;  %326 = vmatpush.msra.mxu2 %v208_v5  ;;  %v277_v5 = vld [vmem:[%s3437_s2 + $0x7c8] sm:$0xff] }
   0x8   :  { %v84_v7 = vld [vmem:[%s3437_s2 + $0x1c0] sm:$0xff]  ;;  %345 = vmatpush.msra.mxu3 %v276_v6  ;;  %v209_v6 = vld [vmem:[%s3437_s2 + $0x5a8] sm:$0xff] }
   0x9   :  { %v148_v8 = vld [vmem:[%s3437_s2 + $0x3c0] sm:$0xff]  ;;  %285 = vmatpush.msra.mxu0 %v84_v7  ;;  %v85_v7 = vld [vmem:[%s3437_s2 + $0x1c8] sm:$0xff] }
   0xa   :  { %v272_v9 = vld [vmem:[%s3437_s2 + $0x7a0] sm:$0xff]  ;;  %305 = vmatpush.msra.mxu1 %v148_v8  ;;  %v149_v8 = vld [vmem:[%s3437_s2 + $0x3c8] sm:$0xff] }
   0xb   :  { %v80_v10 = vld [vmem:[%s3437_s2 + $0x1a0] sm:$0xff]  ;;  %346 = vmatpush.msra.mxu3 %v272_v9  ;;  %v273_v9 = vld [vmem:[%s3437_s2 + $0x7a8] sm:$0xff] }
   0xc   :  { %v204_v11 = vld [vmem:[%s3437_s2 + $0x580] sm:$0xff]  ;;  %286 = vmatpush.msra.mxu0 %v80_v10  ;;  %v205_v10 = vld [vmem:[%s3437_s2 + $0x588] sm:$0xff] }
   0xd   :  { %v144_v12 = vld [vmem:[%s3437_s2 + $0x3a0] sm:$0xff]  ;;  %327 = vmatpush.msra.mxu2 %v204_v11  ;;  %v81_v11 = vld [vmem:[%s3437_s2 + $0x1a8] sm:$0xff] }
   0xe   :  { %v268_v13 = vld [vmem:[%s3437_s2 + $0x780] sm:$0xff]  ;;  %306 = vmatpush.msra.mxu1 %v144_v12  ;;  %v145_v12 = vld [vmem:[%s3437_s2 + $0x3a8] sm:$0xff] }
   0xf   :  { %v76_v14 = vld [vmem:[%s3437_s2 + $0x180] sm:$0xff]  ;;  %347 = vmatpush.msra.mxu3 %v268_v13  ;;  %v269_v13 = vld [vmem:[%s3437_s2 + $0x788] sm:$0xff] }
  0x10   :  { %v140_v15 = vld [vmem:[%s3437_s2 + $0x380] sm:$0xff]  ;;  %287 = vmatpush.msra.mxu0 %v76_v14  ;;  %v201_v14 = vld [vmem:[%s3437_s2 + $0x568] sm:$0xff] }
  0x11   :  { %v200_v16 = vld [vmem:[%s3437_s2 + $0x560] sm:$0xff]  ;;  %307 = vmatpush.msra.mxu1 %v140_v15  ;;  %v77_v15 = vld [vmem:[%s3437_s2 + $0x188] sm:$0xff] }
  0x12   :  { %v264_v17 = vld [vmem:[%s3437_s2 + $0x760] sm:$0xff]  ;;  %328 = vmatpush.msra.mxu2 %v200_v16  ;;  %v141_v16 = vld [vmem:[%s3437_s2 + $0x388] sm:$0xff] }
  0x13   :  { %v72_v18 = vld [vmem:[%s3437_s2 + $0x160] sm:$0xff]  ;;  %348 = vmatpush.msra.mxu3 %v264_v17  ;;  %v265_v17 = vld [vmem:[%s3437_s2 + $0x768] sm:$0xff] }
  0x14   :  { %v136_v19 = vld [vmem:[%s3437_s2 + $0x360] sm:$0xff]  ;;  %288 = vmatpush.msra.mxu0 %v72_v18  ;;  %v197_v18 = vld [vmem:[%s3437_s2 + $0x548] sm:$0xff] }
  0x15   :  { %v196_v20 = vld [vmem:[%s3437_s2 + $0x540] sm:$0xff]  ;;  %308 = vmatpush.msra.mxu1 %v136_v19  ;;  %v73_v19 = vld [vmem:[%s3437_s2 + $0x168] sm:$0xff] }
  0x16   :  { %v260_v21 = vld [vmem:[%s3437_s2 + $0x740] sm:$0xff]  ;;  %329 = vmatpush.msra.mxu2 %v196_v20  ;;  %v137_v20 = vld [vmem:[%s3437_s2 + $0x368] sm:$0xff] }
  0x17   :  { %v68_v22 = vld [vmem:[%s3437_s2 + $0x140] sm:$0xff]  ;;  %349 = vmatpush.msra.mxu3 %v260_v21  ;;  %v261_v21 = vld [vmem:[%s3437_s2 + $0x748] sm:$0xff] }
  0x18   :  { %v132_v23 = vld [vmem:[%s3437_s2 + $0x340] sm:$0xff]  ;;  %289 = vmatpush.msra.mxu0 %v68_v22  ;;  %v193_v22 = vld [vmem:[%s3437_s2 + $0x528] sm:$0xff] }
  0x19   :  { %v192_v24 = vld [vmem:[%s3437_s2 + $0x520] sm:$0xff]  ;;  %309 = vmatpush.msra.mxu1 %v132_v23  ;;  %v69_v23 = vld [vmem:[%s3437_s2 + $0x148] sm:$0xff] }
  0x1a   :  { %v256_v25 = vld [vmem:[%s3437_s2 + $0x720] sm:$0xff]  ;;  %330 = vmatpush.msra.mxu2 %v192_v24  ;;  %v133_v24 = vld [vmem:[%s3437_s2 + $0x348] sm:$0xff] }
  0x1b   :  { %v64_v26 = vld [vmem:[%s3437_s2 + $0x120] sm:$0xff]  ;;  %350 = vmatpush.msra.mxu3 %v256_v25  ;;  %v257_v25 = vld [vmem:[%s3437_s2 + $0x728] sm:$0xff] }
  0x1c   :  { %v128_v27 = vld [vmem:[%s3437_s2 + $0x320] sm:$0xff]  ;;  %290 = vmatpush.msra.mxu0 %v64_v26  ;;  %v189_v26 = vld [vmem:[%s3437_s2 + $0x508] sm:$0xff] }
  0x1d   :  { %v188_v28 = vld [vmem:[%s3437_s2 + $0x500] sm:$0xff]  ;;  %310 = vmatpush.msra.mxu1 %v128_v27  ;;  %v65_v27 = vld [vmem:[%s3437_s2 + $0x128] sm:$0xff] }
  0x1e   :  { %v252_v29 = vld [vmem:[%s3437_s2 + $0x700] sm:$0xff]  ;;  %331 = vmatpush.msra.mxu2 %v188_v28  ;;  %v129_v28 = vld [vmem:[%s3437_s2 + $0x328] sm:$0xff] }
  0x1f   :  { %v60_v30 = vld [vmem:[%s3437_s2 + $0x100] sm:$0xff]  ;;  %351 = vmatpush.msra.mxu3 %v252_v29  ;;  %v253_v29 = vld [vmem:[%s3437_s2 + $0x708] sm:$0xff] }
  0x20   :  { %v124_v31 = vld [vmem:[%s3437_s2 + $0x300] sm:$0xff]  ;;  %291 = vmatpush.msra.mxu0 %v60_v30  ;;  %v185_v30 = vld [vmem:[%s3437_s2 + $0x4e8] sm:$0xff] }
  0x21   :  { %v184_v32 = vld [vmem:[%s3437_s2 + $0x4e0] sm:$0xff]  ;;  %311 = vmatpush.msra.mxu1 %v124_v31  ;;  %v61_v31 = vld [vmem:[%s3437_s2 + $0x108] sm:$0xff] }
  0x22   :  { %v248_v33 = vld [vmem:[%s3437_s2 + $0x6e0] sm:$0xff]  ;;  %332 = vmatpush.msra.mxu2 %v184_v32  ;;  %v125_v32 = vld [vmem:[%s3437_s2 + $0x308] sm:$0xff] }
  0x23   :  { %v56_v34 = vld [vmem:[%s3437_s2 + $0xe0] sm:$0xff]  ;;  %352 = vmatpush.msra.mxu3 %v248_v33  ;;  %v249_v33 = vld [vmem:[%s3437_s2 + $0x6e8] sm:$0xff] }
  0x24   :  { %v120_v35 = vld [vmem:[%s3437_s2 + $0x2e0] sm:$0xff]  ;;  %292 = vmatpush.msra.mxu0 %v56_v34  ;;  %v181_v34 = vld [vmem:[%s3437_s2 + $0x4c8] sm:$0xff] }
  0x25   :  { %v180_v36 = vld [vmem:[%s3437_s2 + $0x4c0] sm:$0xff]  ;;  %312 = vmatpush.msra.mxu1 %v120_v35  ;;  %v57_v35 = vld [vmem:[%s3437_s2 + $0xe8] sm:$0xff] }
  0x26   :  { %v244_v37 = vld [vmem:[%s3437_s2 + $0x6c0] sm:$0xff]  ;;  %333 = vmatpush.msra.mxu2 %v180_v36  ;;  %v121_v36 = vld [vmem:[%s3437_s2 + $0x2e8] sm:$0xff] }
  0x27   :  { %v52_v38 = vld [vmem:[%s3437_s2 + $0xc0] sm:$0xff]  ;;  %353 = vmatpush.msra.mxu3 %v244_v37  ;;  %v245_v37 = vld [vmem:[%s3437_s2 + $0x6c8] sm:$0xff] }
  0x28   :  { %v116_v39 = vld [vmem:[%s3437_s2 + $0x2c0] sm:$0xff]  ;;  %293 = vmatpush.msra.mxu0 %v52_v38  ;;  %v177_v38 = vld [vmem:[%s3437_s2 + $0x4a8] sm:$0xff] }
  0x29   :  { %v176_v40 = vld [vmem:[%s3437_s2 + $0x4a0] sm:$0xff]  ;;  %313 = vmatpush.msra.mxu1 %v116_v39  ;;  %v53_v39 = vld [vmem:[%s3437_s2 + $0xc8] sm:$0xff] }
  0x2a   :  { %v240_v41 = vld [vmem:[%s3437_s2 + $0x6a0] sm:$0xff]  ;;  %334 = vmatpush.msra.mxu2 %v176_v40  ;;  %v117_v40 = vld [vmem:[%s3437_s2 + $0x2c8] sm:$0xff] }
  0x2b   :  { %v48_v42 = vld [vmem:[%s3437_s2 + $0xa0] sm:$0xff]  ;;  %354 = vmatpush.msra.mxu3 %v240_v41  ;;  %v241_v41 = vld [vmem:[%s3437_s2 + $0x6a8] sm:$0xff] }
  0x2c   :  { %v112_v43 = vld [vmem:[%s3437_s2 + $0x2a0] sm:$0xff]  ;;  %294 = vmatpush.msra.mxu0 %v48_v42  ;;  %v173_v42 = vld [vmem:[%s3437_s2 + $0x488] sm:$0xff] }
  0x2d   :  { %v172_v44 = vld [vmem:[%s3437_s2 + $0x480] sm:$0xff]  ;;  %314 = vmatpush.msra.mxu1 %v112_v43  ;;  %v49_v43 = vld [vmem:[%s3437_s2 + $0xa8] sm:$0xff] }
  0x2e   :  { %v236_v45 = vld [vmem:[%s3437_s2 + $0x680] sm:$0xff]  ;;  %335 = vmatpush.msra.mxu2 %v172_v44  ;;  %v113_v44 = vld [vmem:[%s3437_s2 + $0x2a8] sm:$0xff] }
  0x2f   :  { %v44_v46 = vld [vmem:[%s3437_s2 + $0x80] sm:$0xff]  ;;  %355 = vmatpush.msra.mxu3 %v236_v45  ;;  %v237_v45 = vld [vmem:[%s3437_s2 + $0x688] sm:$0xff] }
  0x30   :  { %v108_v47 = vld [vmem:[%s3437_s2 + $0x280] sm:$0xff]  ;;  %295 = vmatpush.msra.mxu0 %v44_v46  ;;  %v169_v46 = vld [vmem:[%s3437_s2 + $0x468] sm:$0xff] }
  0x31   :  { %v168_v48 = vld [vmem:[%s3437_s2 + $0x460] sm:$0xff]  ;;  %315 = vmatpush.msra.mxu1 %v108_v47  ;;  %v45_v47 = vld [vmem:[%s3437_s2 + $0x88] sm:$0xff] }
  0x32   :  { %v232_v49 = vld [vmem:[%s3437_s2 + $0x660] sm:$0xff]  ;;  %336 = vmatpush.msra.mxu2 %v168_v48  ;;  %v109_v48 = vld [vmem:[%s3437_s2 + $0x288] sm:$0xff] }
  0x33   :  { %v40_v50 = vld [vmem:[%s3437_s2 + $0x60] sm:$0xff]  ;;  %356 = vmatpush.msra.mxu3 %v232_v49  ;;  %v233_v49 = vld [vmem:[%s3437_s2 + $0x668] sm:$0xff] }
  0x34   :  { %v104_v51 = vld [vmem:[%s3437_s2 + $0x260] sm:$0xff]  ;;  %296 = vmatpush.msra.mxu0 %v40_v50  ;;  %v165_v50 = vld [vmem:[%s3437_s2 + $0x448] sm:$0xff] }
  0x35   :  { %v164_v52 = vld [vmem:[%s3437_s2 + $0x440] sm:$0xff]  ;;  %316 = vmatpush.msra.mxu1 %v104_v51  ;;  %v41_v51 = vld [vmem:[%s3437_s2 + $0x68] sm:$0xff] }
  0x36   :  { %v228_v53 = vld [vmem:[%s3437_s2 + $0x640] sm:$0xff]  ;;  %337 = vmatpush.msra.mxu2 %v164_v52  ;;  %v105_v52 = vld [vmem:[%s3437_s2 + $0x268] sm:$0xff] }
  0x37   :  { %v36_v54 = vld [vmem:[%s3437_s2 + $0x40] sm:$0xff]  ;;  %357 = vmatpush.msra.mxu3 %v228_v53  ;;  %v229_v53 = vld [vmem:[%s3437_s2 + $0x648] sm:$0xff] }
  0x38   :  { %v100_v55 = vld [vmem:[%s3437_s2 + $0x240] sm:$0xff]  ;;  %297 = vmatpush.msra.mxu0 %v36_v54  ;;  %v161_v54 = vld [vmem:[%s3437_s2 + $0x428] sm:$0xff] }
  0x39   :  { %v160_v56 = vld [vmem:[%s3437_s2 + $0x420] sm:$0xff]  ;;  %317 = vmatpush.msra.mxu1 %v100_v55  ;;  %v37_v55 = vld [vmem:[%s3437_s2 + $0x48] sm:$0xff] }
  0x3a   :  { %v224_v57 = vld [vmem:[%s3437_s2 + $0x620] sm:$0xff]  ;;  %338 = vmatpush.msra.mxu2 %v160_v56  ;;  %v101_v56 = vld [vmem:[%s3437_s2 + $0x248] sm:$0xff] }
  0x3b   :  { %v32_v58 = vld [vmem:[%s3437_s2 + $0x20] sm:$0xff]  ;;  %358 = vmatpush.msra.mxu3 %v224_v57  ;;  %v225_v57 = vld [vmem:[%s3437_s2 + $0x628] sm:$0xff] }
  0x3c   :  { %v96_v59 = vld [vmem:[%s3437_s2 + $0x220] sm:$0xff]  ;;  %298 = vmatpush.msra.mxu0 %v32_v58  ;;  %v157_v58 = vld [vmem:[%s3437_s2 + $0x408] sm:$0xff] }
  0x3d   :  { %v156_v60 = vld [vmem:[%s3437_s2 + $0x400] sm:$0xff]  ;;  %318 = vmatpush.msra.mxu1 %v96_v59  ;;  %v33_v59 = vld [vmem:[%s3437_s2 + $0x28] sm:$0xff] }
  0x3e   :  { %v220_v61 = vld [vmem:[%s3437_s2 + $0x600] sm:$0xff]  ;;  %339 = vmatpush.msra.mxu2 %v156_v60  ;;  %v1911_v60 = vld [vmem:[%s3438_s1 + $0x10] sm:$0xff] }
  0x3f   :  { %v28_v0 = vld [vmem:[%s3437_s2] sm:$0xff]  ;;  %359 = vmatpush.msra.mxu3 %v220_v61  ;;  %v97_v61 = vld [vmem:[%s3437_s2 + $0x228] sm:$0xff]  ;;  %340 = vmatmul.f32.vlgmr.msra.gmra.mxu2 %v1911_v60 }
  0x40   :  { %v92_v1 = vld [vmem:[%s3437_s2 + $0x200] sm:$0xff]  ;;  %404 = vmatpush.msrb.mxu2 %v217_v62  ;;  %299 = vmatpush.msra.mxu0 %v28_v0  ;;  %v218_v62 = vld [vmem:[%s3437_s2 + $0x5f0] sm:$0xff]  ;;  %v1925_v0 = vld [vmem:[%s3438_s1 + $0x18] sm:$0xff] }
  0x41   :  { %424 = vmatpush.msrb.mxu3 %v281_v63  ;;  %319 = vmatpush.msra.mxu1 %v92_v1  ;;  %v221_v63 = vld [vmem:[%s3437_s2 + $0x608] sm:$0xff] }
  0x42   :  { %405 = vmatpush.msrb.mxu2 %v213_v2  ;;  %364 = vmatpush.msrb.mxu0 %v89_v3  ;;  %v29_v1 = vld [vmem:[%s3437_s2 + $0x8] sm:$0xff]  ;;  %v214_v2 = vld [vmem:[%s3437_s2 + $0x5d0] sm:$0xff] }
  0x43   :  { %384 = vmatpush.msrb.mxu1 %v153_v4  ;;  %425 = vmatpush.msrb.mxu3 %v277_v5  ;;  %v282_v3 = vld [vmem:[%s3437_s2 + $0x7f0] sm:$0xff]  ;;  %v93_v4 = vld [vmem:[%s3437_s2 + $0x208] sm:$0xff]  ;;  %v1943_v5 = vld [vmem:[%s3438_s1] sm:$0xff] }
  0x44   :  { %406 = vmatpush.msrb.mxu2 %v209_v6  ;;  %365 = vmatpush.msrb.mxu0 %v85_v7  ;;  %v1949_v6 = vld [vmem:[%s3438_s1 + $0x8] sm:$0xff]  ;;  %v90_v7 = vld [vmem:[%s3437_s2 + $0x1f0] sm:$0xff] }
  0x45   :  { %385 = vmatpush.msrb.mxu1 %v149_v8  ;;  %426 = vmatpush.msrb.mxu3 %v273_v9  ;;  %v154_v8 = vld [vmem:[%s3437_s2 + $0x3f0] sm:$0xff] }
  0x46   :  { %407 = vmatpush.msrb.mxu2 %v205_v10  ;;  %366 = vmatpush.msrb.mxu0 %v81_v11  ;;  %v210_v9 = vld [vmem:[%s3437_s2 + $0x5b0] sm:$0xff] }
  0x47   :  { %386 = vmatpush.msrb.mxu1 %v145_v12  ;;  %427 = vmatpush.msrb.mxu3 %v269_v13  ;;  %v278_v10 = vld [vmem:[%s3437_s2 + $0x7d0] sm:$0xff] }
  0x48   :  { %408 = vmatpush.msrb.mxu2 %v201_v14  ;;  %367 = vmatpush.msrb.mxu0 %v77_v15  ;;  %v86_v11 = vld [vmem:[%s3437_s2 + $0x1d0] sm:$0xff] }
  0x49   :  { %387 = vmatpush.msrb.mxu1 %v141_v16  ;;  %428 = vmatpush.msrb.mxu3 %v265_v17  ;;  %v150_v12 = vld [vmem:[%s3437_s2 + $0x3d0] sm:$0xff] }
  0x4a   :  { %409 = vmatpush.msrb.mxu2 %v197_v18  ;;  %368 = vmatpush.msrb.mxu0 %v73_v19  ;;  %v206_v13 = vld [vmem:[%s3437_s2 + $0x590] sm:$0xff] }
  0x4b   :  { %388 = vmatpush.msrb.mxu1 %v137_v20  ;;  %429 = vmatpush.msrb.mxu3 %v261_v21  ;;  %v274_v14 = vld [vmem:[%s3437_s2 + $0x7b0] sm:$0xff] }
  0x4c   :  { %410 = vmatpush.msrb.mxu2 %v193_v22  ;;  %369 = vmatpush.msrb.mxu0 %v69_v23  ;;  %v82_v15 = vld [vmem:[%s3437_s2 + $0x1b0] sm:$0xff] }
  0x4d   :  { %389 = vmatpush.msrb.mxu1 %v133_v24  ;;  %430 = vmatpush.msrb.mxu3 %v257_v25  ;;  %v146_v16 = vld [vmem:[%s3437_s2 + $0x3b0] sm:$0xff] }
  0x4e   :  { %411 = vmatpush.msrb.mxu2 %v189_v26  ;;  %370 = vmatpush.msrb.mxu0 %v65_v27  ;;  %v202_v17 = vld [vmem:[%s3437_s2 + $0x570] sm:$0xff] }
  0x4f   :  { %390 = vmatpush.msrb.mxu1 %v129_v28  ;;  %431 = vmatpush.msrb.mxu3 %v253_v29  ;;  %v270_v18 = vld [vmem:[%s3437_s2 + $0x790] sm:$0xff] }
  0x50   :  { %412 = vmatpush.msrb.mxu2 %v185_v30  ;;  %371 = vmatpush.msrb.mxu0 %v61_v31  ;;  %v78_v19 = vld [vmem:[%s3437_s2 + $0x190] sm:$0xff] }
  0x51   :  { %391 = vmatpush.msrb.mxu1 %v125_v32  ;;  %432 = vmatpush.msrb.mxu3 %v249_v33  ;;  %v142_v20 = vld [vmem:[%s3437_s2 + $0x390] sm:$0xff] }
  0x52   :  { %413 = vmatpush.msrb.mxu2 %v181_v34  ;;  %372 = vmatpush.msrb.mxu0 %v57_v35  ;;  %v198_v21 = vld [vmem:[%s3437_s2 + $0x550] sm:$0xff] }
  0x53   :  { %392 = vmatpush.msrb.mxu1 %v121_v36  ;;  %433 = vmatpush.msrb.mxu3 %v245_v37  ;;  %v266_v22 = vld [vmem:[%s3437_s2 + $0x770] sm:$0xff] }
  0x54   :  { %414 = vmatpush.msrb.mxu2 %v177_v38  ;;  %373 = vmatpush.msrb.mxu0 %v53_v39  ;;  %v74_v23 = vld [vmem:[%s3437_s2 + $0x170] sm:$0xff] }
  0x55   :  { %393 = vmatpush.msrb.mxu1 %v117_v40  ;;  %434 = vmatpush.msrb.mxu3 %v241_v41  ;;  %v138_v24 = vld [vmem:[%s3437_s2 + $0x370] sm:$0xff] }
  0x56   :  { %415 = vmatpush.msrb.mxu2 %v173_v42  ;;  %374 = vmatpush.msrb.mxu0 %v49_v43  ;;  %v194_v25 = vld [vmem:[%s3437_s2 + $0x530] sm:$0xff] }
  0x57   :  { %394 = vmatpush.msrb.mxu1 %v113_v44  ;;  %435 = vmatpush.msrb.mxu3 %v237_v45  ;;  %v262_v26 = vld [vmem:[%s3437_s2 + $0x750] sm:$0xff] }
  0x58   :  { %416 = vmatpush.msrb.mxu2 %v169_v46  ;;  %375 = vmatpush.msrb.mxu0 %v45_v47  ;;  %v70_v27 = vld [vmem:[%s3437_s2 + $0x150] sm:$0xff] }
  0x59   :  { %395 = vmatpush.msrb.mxu1 %v109_v48  ;;  %436 = vmatpush.msrb.mxu3 %v233_v49  ;;  %v134_v28 = vld [vmem:[%s3437_s2 + $0x350] sm:$0xff] }
  0x5a   :  { %417 = vmatpush.msrb.mxu2 %v165_v50  ;;  %376 = vmatpush.msrb.mxu0 %v41_v51  ;;  %v190_v29 = vld [vmem:[%s3437_s2 + $0x510] sm:$0xff] }
  0x5b   :  { %396 = vmatpush.msrb.mxu1 %v105_v52  ;;  %437 = vmatpush.msrb.mxu3 %v229_v53  ;;  %v258_v30 = vld [vmem:[%s3437_s2 + $0x730] sm:$0xff] }
  0x5c   :  { %418 = vmatpush.msrb.mxu2 %v161_v54  ;;  %377 = vmatpush.msrb.mxu0 %v37_v55  ;;  %v66_v31 = vld [vmem:[%s3437_s2 + $0x130] sm:$0xff] }
  0x5d   :  { %397 = vmatpush.msrb.mxu1 %v101_v56  ;;  %438 = vmatpush.msrb.mxu3 %v225_v57  ;;  %v130_v32 = vld [vmem:[%s3437_s2 + $0x330] sm:$0xff] }
  0x5e   :  { %419 = vmatpush.msrb.mxu2 %v157_v58  ;;  %378 = vmatpush.msrb.mxu0 %v33_v59  ;;  %v186_v33 = vld [vmem:[%s3437_s2 + $0x4f0] sm:$0xff] }
  0x5f   :  { %398 = vmatpush.msrb.mxu1 %v97_v61  ;;  %439 = vmatpush.msrb.mxu3 %v221_v63  ;;  %v254_v34 = vld [vmem:[%s3437_s2 + $0x710] sm:$0xff] }
  0x60   :  { %484 = vmatpush.msra.mxu2 %v218_v62  ;;  %360 = vmatmul.f32.vlgmr.msra.gmra.mxu3 %v1925_v0  ;;  %v62_v35 = vld [vmem:[%s3437_s2 + $0x110] sm:$0xff] }
  0x61   :  { %379 = vmatpush.msrb.mxu0 %v29_v1  ;;  %504 = vmatpush.msra.mxu3 %v282_v3  ;;  %v126_v36 = vld [vmem:[%s3437_s2 + $0x310] sm:$0xff]  ;;  %v219_v1 = vld [vmem:[%s3437_s2 + $0x5f8] sm:$0xff] }
  0x62   :  { %485 = vmatpush.msra.mxu2 %v214_v2  ;;  %399 = vmatpush.msrb.mxu1 %v93_v4  ;;  %v182_v37 = vld [vmem:[%s3437_s2 + $0x4d0] sm:$0xff] }
  0x63   :  { %300 = vmatmul.f32.vlgmr.msra.gmra.mxu0 %v1943_v5  ;;  %320 = vmatmul.f32.vlgmr.msra.gmra.mxu1 %v1949_v6  ;;  %v250_v38 = vld [vmem:[%s3437_s2 + $0x6f0] sm:$0xff] }
  0x64   :  { %444 = vmatpush.msra.mxu0 %v90_v7  ;;  %464 = vmatpush.msra.mxu1 %v154_v8  ;;  %v58_v39 = vld [vmem:[%s3437_s2 + $0xf0] sm:$0xff]  ;;  %v215_v7 = vld [vmem:[%s3437_s2 + $0x5d8] sm:$0xff] }
  0x65   :  { %486 = vmatpush.msra.mxu2 %v210_v9  ;;  %505 = vmatpush.msra.mxu3 %v278_v10  ;;  %v122_v40 = vld [vmem:[%s3437_s2 + $0x2f0] sm:$0xff]  ;;  %v283_v8 = vld [vmem:[%s3437_s2 + $0x7f8] sm:$0xff] }
  0x66   :  { %445 = vmatpush.msra.mxu0 %v86_v11  ;;  %465 = vmatpush.msra.mxu1 %v150_v12  ;;  %v178_v41 = vld [vmem:[%s3437_s2 + $0x4b0] sm:$0xff]  ;;  %v91_v11 = vld [vmem:[%s3437_s2 + $0x1f8] sm:$0xff] }
  0x67   :  { %487 = vmatpush.msra.mxu2 %v206_v13  ;;  %506 = vmatpush.msra.mxu3 %v274_v14  ;;  %v246_v42 = vld [vmem:[%s3437_s2 + $0x6d0] sm:$0xff]  ;;  %v155_v12 = vld [vmem:[%s3437_s2 + $0x3f8] sm:$0xff] }
  0x68   :  { %446 = vmatpush.msra.mxu0 %v82_v15  ;;  %466 = vmatpush.msra.mxu1 %v146_v16  ;;  %v54_v43 = vld [vmem:[%s3437_s2 + $0xd0] sm:$0xff]  ;;  %v211_v13 = vld [vmem:[%s3437_s2 + $0x5b8] sm:$0xff] }
  0x69   :  { %488 = vmatpush.msra.mxu2 %v202_v17  ;;  %507 = vmatpush.msra.mxu3 %v270_v18  ;;  %v118_v44 = vld [vmem:[%s3437_s2 + $0x2d0] sm:$0xff]  ;;  %v279_v14 = vld [vmem:[%s3437_s2 + $0x7d8] sm:$0xff] }
  0x6a   :  { %447 = vmatpush.msra.mxu0 %v78_v19  ;;  %467 = vmatpush.msra.mxu1 %v142_v20  ;;  %v174_v45 = vld [vmem:[%s3437_s2 + $0x490] sm:$0xff]  ;;  %v87_v15 = vld [vmem:[%s3437_s2 + $0x1d8] sm:$0xff] }
  0x6b   :  { %489 = vmatpush.msra.mxu2 %v198_v21  ;;  %508 = vmatpush.msra.mxu3 %v266_v22  ;;  %v242_v46 = vld [vmem:[%s3437_s2 + $0x6b0] sm:$0xff]  ;;  %v151_v16 = vld [vmem:[%s3437_s2 + $0x3d8] sm:$0xff] }
  0x6c   :  { %448 = vmatpush.msra.mxu0 %v74_v23  ;;  %468 = vmatpush.msra.mxu1 %v138_v24  ;;  %v50_v47 = vld [vmem:[%s3437_s2 + $0xb0] sm:$0xff]  ;;  %v207_v17 = vld [vmem:[%s3437_s2 + $0x598] sm:$0xff] }
  0x6d   :  { %490 = vmatpush.msra.mxu2 %v194_v25  ;;  %509 = vmatpush.msra.mxu3 %v262_v26  ;;  %v114_v48 = vld [vmem:[%s3437_s2 + $0x2b0] sm:$0xff]  ;;  %v275_v18 = vld [vmem:[%s3437_s2 + $0x7b8] sm:$0xff] }
  0x6e   :  { %449 = vmatpush.msra.mxu0 %v70_v27  ;;  %469 = vmatpush.msra.mxu1 %v134_v28  ;;  %v170_v49 = vld [vmem:[%s3437_s2 + $0x470] sm:$0xff]  ;;  %v83_v19 = vld [vmem:[%s3437_s2 + $0x1b8] sm:$0xff] }
  0x6f   :  { %491 = vmatpush.msra.mxu2 %v190_v29  ;;  %510 = vmatpush.msra.mxu3 %v258_v30  ;;  %v238_v50 = vld [vmem:[%s3437_s2 + $0x690] sm:$0xff]  ;;  %v147_v20 = vld [vmem:[%s3437_s2 + $0x3b8] sm:$0xff] }
  0x70   :  { %450 = vmatpush.msra.mxu0 %v66_v31  ;;  %470 = vmatpush.msra.mxu1 %v130_v32  ;;  %v46_v51 = vld [vmem:[%s3437_s2 + $0x90] sm:$0xff]  ;;  %v203_v21 = vld [vmem:[%s3437_s2 + $0x578] sm:$0xff] }
  0x71   :  { %492 = vmatpush.msra.mxu2 %v186_v33  ;;  %511 = vmatpush.msra.mxu3 %v254_v34  ;;  %v110_v52 = vld [vmem:[%s3437_s2 + $0x290] sm:$0xff]  ;;  %v271_v22 = vld [vmem:[%s3437_s2 + $0x798] sm:$0xff] }
  0x72   :  { %451 = vmatpush.msra.mxu0 %v62_v35  ;;  %471 = vmatpush.msra.mxu1 %v126_v36  ;;  %v166_v53 = vld [vmem:[%s3437_s2 + $0x450] sm:$0xff]  ;;  %v79_v23 = vld [vmem:[%s3437_s2 + $0x198] sm:$0xff] }
  0x73   :  { %493 = vmatpush.msra.mxu2 %v182_v37  ;;  %512 = vmatpush.msra.mxu3 %v250_v38  ;;  %v234_v54 = vld [vmem:[%s3437_s2 + $0x670] sm:$0xff]  ;;  %v143_v24 = vld [vmem:[%s3437_s2 + $0x398] sm:$0xff] }
  0x74   :  { %452 = vmatpush.msra.mxu0 %v58_v39  ;;  %472 = vmatpush.msra.mxu1 %v122_v40  ;;  %v42_v55 = vld [vmem:[%s3437_s2 + $0x70] sm:$0xff]  ;;  %v199_v25 = vld [vmem:[%s3437_s2 + $0x558] sm:$0xff] }
  0x75   :  { %494 = vmatpush.msra.mxu2 %v178_v41  ;;  %513 = vmatpush.msra.mxu3 %v246_v42  ;;  %v106_v56 = vld [vmem:[%s3437_s2 + $0x270] sm:$0xff]  ;;  %v267_v26 = vld [vmem:[%s3437_s2 + $0x778] sm:$0xff] }
  0x76   :  { %453 = vmatpush.msra.mxu0 %v54_v43  ;;  %473 = vmatpush.msra.mxu1 %v118_v44  ;;  %v162_v57 = vld [vmem:[%s3437_s2 + $0x430] sm:$0xff]  ;;  %v75_v27 = vld [vmem:[%s3437_s2 + $0x178] sm:$0xff] }
  0x77   :  { %495 = vmatpush.msra.mxu2 %v174_v45  ;;  %514 = vmatpush.msra.mxu3 %v242_v46  ;;  %v230_v58 = vld [vmem:[%s3437_s2 + $0x650] sm:$0xff]  ;;  %v139_v28 = vld [vmem:[%s3437_s2 + $0x378] sm:$0xff] }
  0x78   :  { %420 = vmatmul.f32.vlgmr.msrb.gmra.mxu2 %v1911_v60  ;;  %454 = vmatpush.msra.mxu0 %v50_v47  ;;  %v38_v59 = vld [vmem:[%s3437_s2 + $0x50] sm:$0xff]  ;;  %v195_v29 = vld [vmem:[%s3437_s2 + $0x538] sm:$0xff] }
  0x79   :  { %474 = vmatpush.msra.mxu1 %v114_v48  ;;  %496 = vmatpush.msra.mxu2 %v170_v49  ;;  %v102_v61 = vld [vmem:[%s3437_s2 + $0x250] sm:$0xff]  ;;  %v263_v30 = vld [vmem:[%s3437_s2 + $0x758] sm:$0xff] }
  0x7a   :  { %515 = vmatpush.msra.mxu3 %v238_v50  ;;  %455 = vmatpush.msra.mxu0 %v46_v51  ;;  %v158_v62 = vld [vmem:[%s3437_s2 + $0x410] sm:$0xff]  ;;  %v71_v31 = vld [vmem:[%s3437_s2 + $0x158] sm:$0xff] }
  0x7b   :  { %440 = vmatmul.f32.vlgmr.msrb.gmra.mxu3 %v1925_v0  ;;  %475 = vmatpush.msra.mxu1 %v110_v52  ;;  %v226_v63 = vld [vmem:[%s3437_s2 + $0x630] sm:$0xff]  ;;  %v135_v32 = vld [vmem:[%s3437_s2 + $0x358] sm:$0xff] }
  0x7c   :  { %497 = vmatpush.msra.mxu2 %v166_v53  ;;  %516 = vmatpush.msra.mxu3 %v234_v54  ;;  %v34_v2 = vld [vmem:[%s3437_s2 + $0x30] sm:$0xff]  ;;  %v191_v33 = vld [vmem:[%s3437_s2 + $0x518] sm:$0xff] }
  0x7d   :  { %380 = vmatmul.f32.vlgmr.msrb.gmra.mxu0 %v1943_v5  ;;  %400 = vmatmul.f32.vlgmr.msrb.gmra.mxu1 %v1949_v6  ;;  %v98_v3 = vld [vmem:[%s3437_s2 + $0x230] sm:$0xff]  ;;  %v259_v34 = vld [vmem:[%s3437_s2 + $0x738] sm:$0xff] }
  0x7e   :  { %456 = vmatpush.msra.mxu0 %v42_v55  ;;  %476 = vmatpush.msra.mxu1 %v106_v56  ;;  %v222_v4 = vld [vmem:[%s3437_s2 + $0x610] sm:$0xff]  ;;  %v67_v35 = vld [vmem:[%s3437_s2 + $0x138] sm:$0xff] }
  0x7f   :  { %498 = vmatpush.msra.mxu2 %v162_v57  ;;  %517 = vmatpush.msra.mxu3 %v230_v58  ;;  %v30_v9 = vld [vmem:[%s3437_s2 + $0x10] sm:$0xff]  ;;  %v131_v36 = vld [vmem:[%s3437_s2 + $0x338] sm:$0xff] }
  0x80   :  { %457 = vmatpush.msra.mxu0 %v38_v59  ;;  %477 = vmatpush.msra.mxu1 %v102_v61  ;;  %v94_v10 = vld [vmem:[%s3437_s2 + $0x210] sm:$0xff]  ;;  %v187_v37 = vld [vmem:[%s3437_s2 + $0x4f8] sm:$0xff] }
  0x81   :  { %499 = vmatpush.msra.mxu2 %v158_v62  ;;  %518 = vmatpush.msra.mxu3 %v226_v63  ;;  %v255_v38 = vld [vmem:[%s3437_s2 + $0x718] sm:$0xff] }
  0x82   :  { %500 = vmatmul.f32.vlgmr.msra.gmra.mxu2 %v1911_v60  ;;  %458 = vmatpush.msra.mxu0 %v34_v2  ;;  %v63_v39 = vld [vmem:[%s3437_s2 + $0x118] sm:$0xff] }
  0x83   :  { %564 = vmatpush.msrb.mxu2 %v219_v1  ;;  %478 = vmatpush.msra.mxu1 %v98_v3  ;;  %v127_v40 = vld [vmem:[%s3437_s2 + $0x318] sm:$0xff] }
  0x84   :  { %519 = vmatpush.msra.mxu3 %v222_v4  ;;  %459 = vmatpush.msra.mxu0 %v30_v9  ;;  %v183_v41 = vld [vmem:[%s3437_s2 + $0x4d8] sm:$0xff] }
  0x85   :  { %520 = vmatmul.f32.vlgmr.msra.gmra.mxu3 %v1925_v0  ;;  %565 = vmatpush.msrb.mxu2 %v215_v7  ;;  %v251_v42 = vld [vmem:[%s3437_s2 + $0x6f8] sm:$0xff]  ;;  %v745_v7 = vld [vmem:[%s3439_s3 + $0x468] sm:$0xff] }
  0x86   :  { %584 = vmatpush.msrb.mxu3 %v283_v8  ;;  %479 = vmatpush.msra.mxu1 %v94_v10  ;;  %v59_v43 = vld [vmem:[%s3437_s2 + $0xf8] sm:$0xff] }
  0x87   :  { %460 = vmatmul.f32.vlgmr.msra.gmra.mxu0 %v1943_v5  ;;  %480 = vmatmul.f32.vlgmr.msra.gmra.mxu1 %v1949_v6  ;;  %v123_v44 = vld [vmem:[%s3437_s2 + $0x2f8] sm:$0xff] }
  0x88   :  { %524 = vmatpush.msrb.mxu0 %v91_v11  ;;  %544 = vmatpush.msrb.mxu1 %v155_v12  ;;  %v179_v45 = vld [vmem:[%s3437_s2 + $0x4b8] sm:$0xff]  ;;  %v742_v11 = vld [vmem:[%s3439_s3 + $0x450] sm:$0xff]  ;;  %v793_v12 = vld [vmem:[%s3439_s3 + $0x5e8] sm:$0xff] }
  0x89   :  { %566 = vmatpush.msrb.mxu2 %v211_v13  ;;  %585 = vmatpush.msrb.mxu3 %v279_v14  ;;  %v247_v46 = vld [vmem:[%s3437_s2 + $0x6d8] sm:$0xff]  ;;  %v649_v14 = vld [vmem:[%s3439_s3 + $0x168] sm:$0xff] }
  0x8a   :  { %525 = vmatpush.msrb.mxu0 %v87_v15  ;;  %545 = vmatpush.msrb.mxu1 %v151_v16  ;;  %v55_v47 = vld [vmem:[%s3437_s2 + $0xd8] sm:$0xff]  ;;  %v697_v15 = vld [vmem:[%s3439_s3 + $0x2e8] sm:$0xff] }
  0x8b   :  { %567 = vmatpush.msrb.mxu2 %v207_v17  ;;  %586 = vmatpush.msrb.mxu3 %v275_v18  ;;  %v119_v48 = vld [vmem:[%s3437_s2 + $0x2d8] sm:$0xff]  ;;  %v646_v17 = vld [vmem:[%s3439_s3 + $0x150] sm:$0xff] }
  0x8c   :  { %526 = vmatpush.msrb.mxu0 %v83_v19  ;;  %546 = vmatpush.msrb.mxu1 %v147_v20  ;;  %v175_v49 = vld [vmem:[%s3437_s2 + $0x498] sm:$0xff]  ;;  %v694_v18 = vld [vmem:[%s3439_s3 + $0x2d0] sm:$0xff]  ;;  %v736_v19 = vld [vmem:[%s3439_s3 + $0x420] sm:$0xff] }
  0x8d   :  { %568 = vmatpush.msrb.mxu2 %v203_v21  ;;  %587 = vmatpush.msrb.mxu3 %v271_v22  ;;  %v243_v50 = vld [vmem:[%s3437_s2 + $0x6b8] sm:$0xff]  ;;  %v733_v21 = vld [vmem:[%s3439_s3 + $0x408] sm:$0xff]  ;;  %v784_v22 = vld [vmem:[%s3439_s3 + $0x5a0] sm:$0xff] }
  0x8e   :  { %527 = vmatpush.msrb.mxu0 %v79_v23  ;;  %547 = vmatpush.msrb.mxu1 %v143_v24  ;;  %v51_v51 = vld [vmem:[%s3437_s2 + $0xb8] sm:$0xff]  ;;  %v640_v23 = vld [vmem:[%s3439_s3 + $0x120] sm:$0xff] }
  0x8f   :  { %569 = vmatpush.msrb.mxu2 %v199_v25  ;;  %588 = vmatpush.msrb.mxu3 %v267_v26  ;;  %v115_v52 = vld [vmem:[%s3437_s2 + $0x2b8] sm:$0xff]  ;;  %v688_v24 = vld [vmem:[%s3439_s3 + $0x2a0] sm:$0xff]  ;;  %v730_v25 = vld [vmem:[%s3439_s3 + $0x3f0] sm:$0xff] }
  0x90   :  { %528 = vmatpush.msrb.mxu0 %v75_v27  ;;  %548 = vmatpush.msrb.mxu1 %v139_v28  ;;  %v171_v53 = vld [vmem:[%s3437_s2 + $0x478] sm:$0xff]  ;;  %v781_v26 = vld [vmem:[%s3439_s3 + $0x588] sm:$0xff] }
  0x91   :  { %570 = vmatpush.msrb.mxu2 %v195_v29  ;;  %589 = vmatpush.msrb.mxu3 %v263_v30  ;;  %v239_v54 = vld [vmem:[%s3437_s2 + $0x698] sm:$0xff]  ;;  %v637_v27 = vld [vmem:[%s3439_s3 + $0x108] sm:$0xff]  ;;  %v778_v30 = vld [vmem:[%s3439_s3 + $0x570] sm:$0xff] }
  0x92   :  { %529 = vmatpush.msrb.mxu0 %v71_v31  ;;  %549 = vmatpush.msrb.mxu1 %v135_v32  ;;  %v47_v55 = vld [vmem:[%s3437_s2 + $0x98] sm:$0xff]  ;;  %v685_v28 = vld [vmem:[%s3439_s3 + $0x288] sm:$0xff]  ;;  %v634_v31 = vld [vmem:[%s3439_s3 + $0xf0] sm:$0xff] }
  0x93   :  { %571 = vmatpush.msrb.mxu2 %v191_v33  ;;  %590 = vmatpush.msrb.mxu3 %v259_v34  ;;  %v111_v56 = vld [vmem:[%s3437_s2 + $0x298] sm:$0xff]  ;;  %v682_v32 = vld [vmem:[%s3439_s3 + $0x270] sm:$0xff]  ;;  %v724_v33 = vld [vmem:[%s3439_s3 + $0x3c0] sm:$0xff] }
  0x94   :  { %530 = vmatpush.msrb.mxu0 %v67_v35  ;;  %550 = vmatpush.msrb.mxu1 %v131_v36  ;;  %v167_v57 = vld [vmem:[%s3437_s2 + $0x458] sm:$0xff] }
  0x95   :  { %572 = vmatpush.msrb.mxu2 %v187_v37  ;;  %591 = vmatpush.msrb.mxu3 %v255_v38  ;;  %v235_v58 = vld [vmem:[%s3437_s2 + $0x678] sm:$0xff]  ;;  %v721_v37 = vld [vmem:[%s3439_s3 + $0x3a8] sm:$0xff]  ;;  %v772_v38 = vld [vmem:[%s3439_s3 + $0x540] sm:$0xff] }
  0x96   :  { %531 = vmatpush.msrb.mxu0 %v63_v39  ;;  %551 = vmatpush.msrb.mxu1 %v127_v40  ;;  %v43_v59 = vld [vmem:[%s3437_s2 + $0x78] sm:$0xff]  ;;  %v628_v39 = vld [vmem:[%s3439_s3 + $0xc0] sm:$0xff] }
  0x97   :  { %573 = vmatpush.msrb.mxu2 %v183_v41  ;;  %592 = vmatpush.msrb.mxu3 %v251_v42  ;;  %v107_v61 = vld [vmem:[%s3437_s2 + $0x278] sm:$0xff]  ;;  %v676_v40 = vld [vmem:[%s3439_s3 + $0x240] sm:$0xff]  ;;  %v718_v41 = vld [vmem:[%s3439_s3 + $0x390] sm:$0xff] }
  0x98   :  { %532 = vmatpush.msrb.mxu0 %v59_v43  ;;  %552 = vmatpush.msrb.mxu1 %v123_v44  ;;  %v163_v62 = vld [vmem:[%s3437_s2 + $0x438] sm:$0xff]  ;;  %v769_v42 = vld [vmem:[%s3439_s3 + $0x528] sm:$0xff] }
  0x99   :  { %574 = vmatpush.msrb.mxu2 %v179_v45  ;;  %593 = vmatpush.msrb.mxu3 %v247_v46  ;;  %v231_v63 = vld [vmem:[%s3437_s2 + $0x658] sm:$0xff]  ;;  %v625_v43 = vld [vmem:[%s3439_s3 + $0xa8] sm:$0xff]  ;;  %v766_v46 = vld [vmem:[%s3439_s3 + $0x510] sm:$0xff] }
  0x9a   :  { %533 = vmatpush.msrb.mxu0 %v55_v47  ;;  %553 = vmatpush.msrb.mxu1 %v119_v48  ;;  %v39_v1 = vld [vmem:[%s3437_s2 + $0x58] sm:$0xff]  ;;  %v673_v44 = vld [vmem:[%s3439_s3 + $0x228] sm:$0xff]  ;;  %v622_v47 = vld [vmem:[%s3439_s3 + $0x90] sm:$0xff] }
  0x9b   :  { %575 = vmatpush.msrb.mxu2 %v175_v49  ;;  %594 = vmatpush.msrb.mxu3 %v243_v50  ;;  %v103_v2 = vld [vmem:[%s3437_s2 + $0x258] sm:$0xff]  ;;  %v670_v48 = vld [vmem:[%s3439_s3 + $0x210] sm:$0xff]  ;;  %v712_v49 = vld [vmem:[%s3439_s3 + $0x360] sm:$0xff] }
  0x9c   :  { %534 = vmatpush.msrb.mxu0 %v51_v51  ;;  %554 = vmatpush.msrb.mxu1 %v115_v52  ;;  %v159_v3 = vld [vmem:[%s3437_s2 + $0x418] sm:$0xff] }
  0x9d   :  { %576 = vmatpush.msrb.mxu2 %v171_v53  ;;  %595 = vmatpush.msrb.mxu3 %v239_v54  ;;  %v227_v4 = vld [vmem:[%s3437_s2 + $0x638] sm:$0xff]  ;;  %v709_v53 = vld [vmem:[%s3439_s3 + $0x348] sm:$0xff]  ;;  %v760_v54 = vld [vmem:[%s3439_s3 + $0x4e0] sm:$0xff] }
  0x9e   :  { %535 = vmatpush.msrb.mxu0 %v47_v55  ;;  %555 = vmatpush.msrb.mxu1 %v111_v56  ;;  %v35_v8 = vld [vmem:[%s3437_s2 + $0x38] sm:$0xff]  ;;  %v616_v55 = vld [vmem:[%s3439_s3 + $0x60] sm:$0xff] }
  0x9f   :  { %577 = vmatpush.msrb.mxu2 %v167_v57  ;;  %596 = vmatpush.msrb.mxu3 %v235_v58  ;;  %v99_v9 = vld [vmem:[%s3437_s2 + $0x238] sm:$0xff]  ;;  %v664_v56 = vld [vmem:[%s3439_s3 + $0x1e0] sm:$0xff]  ;;  %v706_v57 = vld [vmem:[%s3439_s3 + $0x330] sm:$0xff] }
  0xa0   :  { %536 = vmatpush.msrb.mxu0 %v43_v59  ;;  %556 = vmatpush.msrb.mxu1 %v107_v61  ;;  %v223_v10 = vld [vmem:[%s3437_s2 + $0x618] sm:$0xff]  ;;  %v757_v58 = vld [vmem:[%s3439_s3 + $0x4c8] sm:$0xff] }
  0xa1   :  { %578 = vmatpush.msrb.mxu2 %v163_v62  ;;  %597 = vmatpush.msrb.mxu3 %v231_v63  ;;  %v31_v13 = vld [vmem:[%s3437_s2 + $0x18] sm:$0xff]  ;;  %v613_v59 = vld [vmem:[%s3439_s3 + $0x48] sm:$0xff]  ;;  %v754_v63 = vld [vmem:[%s3439_s3 + $0x4b0] sm:$0xff] }
  0xa2   :  { %537 = vmatpush.msrb.mxu0 %v39_v1  ;;  %557 = vmatpush.msrb.mxu1 %v103_v2  ;;  %v739_v16 = vld [vmem:[%s3439_s3 + $0x438] sm:$0xff]  ;;  %v661_v61 = vld [vmem:[%s3439_s3 + $0x1c8] sm:$0xff]  ;;  %v610_v1 = vld [vmem:[%s3439_s3 + $0x30] sm:$0xff] }
  0xa3   :  { %579 = vmatpush.msrb.mxu2 %v159_v3  ;;  %598 = vmatpush.msrb.mxu3 %v227_v4  ;;  %v643_v20 = vld [vmem:[%s3439_s3 + $0x138] sm:$0xff]  ;;  %v658_v2 = vld [vmem:[%s3439_s3 + $0x1b0] sm:$0xff]  ;;  %v700_v3 = vld [vmem:[%s3439_s3 + $0x300] sm:$0xff] }
  0xa4   :  { %580 = vmatmul.f32.vlgmr.msrb.gmra.mxu2 %v1911_v60  ;;  %538 = vmatpush.msrb.mxu0 %v35_v8  ;;  %v95_v60 = vld [vmem:[%s3437_s2 + $0x218] sm:$0xff]  ;;  %v746_v8 = vld [vmem:[%s3439_s3 + $0x470] sm:$0xff] }
  0xa5   :  { %836 = vmatpush.msra.mxu2 %v745_v7  ;;  %558 = vmatpush.msrb.mxu1 %v99_v9  ;;  %v727_v29 = vld [vmem:[%s3439_s3 + $0x3d8] sm:$0xff]  ;;  %v2520_v7 = vld [vmem:[%s3440_s0 + $0x10] sm:$0xff] }
  0xa6   :  { %599 = vmatpush.msrb.mxu3 %v223_v10  ;;  %539 = vmatpush.msrb.mxu0 %v31_v13  ;;  %v775_v34 = vld [vmem:[%s3439_s3 + $0x558] sm:$0xff] }
  0xa7   :  { %600 = vmatmul.f32.vlgmr.msrb.gmra.mxu3 %v1925_v0  ;;  %837 = vmatpush.msra.mxu2 %v742_v11  ;;  %v790_v0 = vld [vmem:[%s3439_s3 + $0x5d0] sm:$0xff]  ;;  %v631_v35 = vld [vmem:[%s3439_s3 + $0xd8] sm:$0xff]  ;;  %v748_v11 = vld [vmem:[%s3439_s3 + $0x480] sm:$0xff] }
  0xa8   :  { %856 = vmatpush.msra.mxu3 %v793_v12  ;;  %559 = vmatpush.msrb.mxu1 %v95_v60  ;;  %v679_v36 = vld [vmem:[%s3439_s3 + $0x258] sm:$0xff]  ;;  %v794_v60 = vld [vmem:[%s3439_s3 + $0x5f0] sm:$0xff] }
  0xa9   :  { %540 = vmatmul.f32.vlgmr.msrb.gmra.mxu0 %v1943_v5  ;;  %560 = vmatmul.f32.vlgmr.msrb.gmra.mxu1 %v1949_v6  ;;  %v787_v5 = vld [vmem:[%s3439_s3 + $0x5b8] sm:$0xff] }
  0xaa   :  { %796 = vmatpush.msra.mxu0 %v649_v14  ;;  %816 = vmatpush.msra.mxu1 %v697_v15  ;;  %v691_v6 = vld [vmem:[%s3439_s3 + $0x2b8] sm:$0xff]  ;;  %v604_v14 = vld [vmem:[%s3439_s3] sm:$0xff] }
  0xab   :  { %838 = vmatpush.msra.mxu2 %v739_v16  ;;  %857 = vmatpush.msra.mxu3 %v790_v0  ;;  %v715_v45 = vld [vmem:[%s3439_s3 + $0x378] sm:$0xff]  ;;  %v652_v15 = vld [vmem:[%s3439_s3 + $0x180] sm:$0xff]  ;;  %v2561_v0 = vld [vmem:[%s3440_s0 + $0x8] sm:$0xff] }
  0xac   :  { %797 = vmatpush.msra.mxu0 %v646_v17  ;;  %817 = vmatpush.msra.mxu1 %v694_v18  ;;  %v763_v50 = vld [vmem:[%s3439_s3 + $0x4f8] sm:$0xff]  ;;  %v2555_v16 = vld [vmem:[%s3440_s0] sm:$0xff]  ;;  %v650_v17 = vld [vmem:[%s3439_s3 + $0x170] sm:$0xff] }
  0xad   :  { %839 = vmatpush.msra.mxu2 %v736_v19  ;;  %858 = vmatpush.msra.mxu3 %v787_v5  ;;  %v619_v51 = vld [vmem:[%s3439_s3 + $0x78] sm:$0xff]  ;;  %v698_v18 = vld [vmem:[%s3439_s3 + $0x2f0] sm:$0xff]  ;;  %v740_v19 = vld [vmem:[%s3439_s3 + $0x440] sm:$0xff] }
  0xae   :  { %798 = vmatpush.msra.mxu0 %v643_v20  ;;  %818 = vmatpush.msra.mxu1 %v691_v6  ;;  %v667_v52 = vld [vmem:[%s3439_s3 + $0x1f8] sm:$0xff] }
  0xaf   :  { %840 = vmatpush.msra.mxu2 %v733_v21  ;;  %859 = vmatpush.msra.mxu3 %v784_v22  ;;  %v703_v62 = vld [vmem:[%s3439_s3 + $0x318] sm:$0xff]  ;;  %v737_v21 = vld [vmem:[%s3439_s3 + $0x428] sm:$0xff]  ;;  %v788_v22 = vld [vmem:[%s3439_s3 + $0x5c0] sm:$0xff] }
  0xb0   :  { %799 = vmatpush.msra.mxu0 %v640_v23  ;;  %819 = vmatpush.msra.mxu1 %v688_v24  ;;  %v751_v4 = vld [vmem:[%s3439_s3 + $0x498] sm:$0xff]  ;;  %v644_v23 = vld [vmem:[%s3439_s3 + $0x140] sm:$0xff] }
  0xb1   :  { %841 = vmatpush.msra.mxu2 %v730_v25  ;;  %860 = vmatpush.msra.mxu3 %v781_v26  ;;  %v607_v9 = vld [vmem:[%s3439_s3 + $0x18] sm:$0xff]  ;;  %v692_v24 = vld [vmem:[%s3439_s3 + $0x2c0] sm:$0xff]  ;;  %v734_v25 = vld [vmem:[%s3439_s3 + $0x410] sm:$0xff] }
  0xb2   :  { %800 = vmatpush.msra.mxu0 %v637_v27  ;;  %820 = vmatpush.msra.mxu1 %v685_v28  ;;  %v655_v10 = vld [vmem:[%s3439_s3 + $0x198] sm:$0xff]  ;;  %v785_v26 = vld [vmem:[%s3439_s3 + $0x5a8] sm:$0xff] }
  0xb3   :  { %842 = vmatpush.msra.mxu2 %v727_v29  ;;  %861 = vmatpush.msra.mxu3 %v778_v30  ;;  %v2538_v12 = vld [vmem:[%s3440_s0 + $0x18] sm:$0xff]  ;;  %v641_v27 = vld [vmem:[%s3439_s3 + $0x128] sm:$0xff]  ;;  %v782_v30 = vld [vmem:[%s3439_s3 + $0x590] sm:$0xff] }
  0xb4   :  { %801 = vmatpush.msra.mxu0 %v634_v31  ;;  %821 = vmatpush.msra.mxu1 %v682_v32  ;;  %v743_v13 = vld [vmem:[%s3439_s3 + $0x458] sm:$0xff]  ;;  %v689_v28 = vld [vmem:[%s3439_s3 + $0x2a8] sm:$0xff]  ;;  %v638_v31 = vld [vmem:[%s3439_s3 + $0x110] sm:$0xff] }
  0xb5   :  { %843 = vmatpush.msra.mxu2 %v724_v33  ;;  %862 = vmatpush.msra.mxu3 %v775_v34  ;;  %v791_v5 = vld [vmem:[%s3439_s3 + $0x5d8] sm:$0xff]  ;;  %v686_v32 = vld [vmem:[%s3439_s3 + $0x290] sm:$0xff]  ;;  %v728_v33 = vld [vmem:[%s3439_s3 + $0x3e0] sm:$0xff] }
  0xb6   :  { %802 = vmatpush.msra.mxu0 %v631_v35  ;;  %822 = vmatpush.msra.mxu1 %v679_v36  ;;  %v647_v20 = vld [vmem:[%s3439_s3 + $0x158] sm:$0xff] }
  0xb7   :  { %844 = vmatpush.msra.mxu2 %v721_v37  ;;  %863 = vmatpush.msra.mxu3 %v772_v38  ;;  %v695_v6 = vld [vmem:[%s3439_s3 + $0x2d8] sm:$0xff]  ;;  %v725_v37 = vld [vmem:[%s3439_s3 + $0x3c8] sm:$0xff]  ;;  %v776_v38 = vld [vmem:[%s3439_s3 + $0x560] sm:$0xff] }
  0xb8   :  { %803 = vmatpush.msra.mxu0 %v628_v39  ;;  %823 = vmatpush.msra.mxu1 %v676_v40  ;;  %v731_v29 = vld [vmem:[%s3439_s3 + $0x3f8] sm:$0xff]  ;;  %v632_v39 = vld [vmem:[%s3439_s3 + $0xe0] sm:$0xff] }
  0xb9   :  { %845 = vmatpush.msra.mxu2 %v718_v41  ;;  %864 = vmatpush.msra.mxu3 %v769_v42  ;;  %v779_v34 = vld [vmem:[%s3439_s3 + $0x578] sm:$0xff]  ;;  %v680_v40 = vld [vmem:[%s3439_s3 + $0x260] sm:$0xff]  ;;  %v722_v41 = vld [vmem:[%s3439_s3 + $0x3b0] sm:$0xff] }
  0xba   :  { %804 = vmatpush.msra.mxu0 %v625_v43  ;;  %824 = vmatpush.msra.mxu1 %v673_v44  ;;  %v635_v35 = vld [vmem:[%s3439_s3 + $0xf8] sm:$0xff]  ;;  %v773_v42 = vld [vmem:[%s3439_s3 + $0x548] sm:$0xff] }
  0xbb   :  { %846 = vmatpush.msra.mxu2 %v715_v45  ;;  %865 = vmatpush.msra.mxu3 %v766_v46  ;;  %v683_v36 = vld [vmem:[%s3439_s3 + $0x278] sm:$0xff]  ;;  %v629_v43 = vld [vmem:[%s3439_s3 + $0xc8] sm:$0xff]  ;;  %v770_v46 = vld [vmem:[%s3439_s3 + $0x530] sm:$0xff] }
  0xbc   :  { %805 = vmatpush.msra.mxu0 %v622_v47  ;;  %825 = vmatpush.msra.mxu1 %v670_v48  ;;  %v677_v44 = vld [vmem:[%s3439_s3 + $0x248] sm:$0xff]  ;;  %v719_v45 = vld [vmem:[%s3439_s3 + $0x398] sm:$0xff]  ;;  %v626_v47 = vld [vmem:[%s3439_s3 + $0xb0] sm:$0xff] }
  0xbd   :  { %847 = vmatpush.msra.mxu2 %v712_v49  ;;  %866 = vmatpush.msra.mxu3 %v763_v50  ;;  %v674_v48 = vld [vmem:[%s3439_s3 + $0x230] sm:$0xff]  ;;  %v716_v49 = vld [vmem:[%s3439_s3 + $0x380] sm:$0xff]  ;;  %v767_v50 = vld [vmem:[%s3439_s3 + $0x518] sm:$0xff] }
  0xbe   :  { %806 = vmatpush.msra.mxu0 %v619_v51  ;;  %826 = vmatpush.msra.mxu1 %v667_v52  ;;  %v623_v51 = vld [vmem:[%s3439_s3 + $0x98] sm:$0xff] }
  0xbf   :  { %848 = vmatpush.msra.mxu2 %v709_v53  ;;  %867 = vmatpush.msra.mxu3 %v760_v54  ;;  %v671_v52 = vld [vmem:[%s3439_s3 + $0x218] sm:$0xff]  ;;  %v713_v53 = vld [vmem:[%s3439_s3 + $0x368] sm:$0xff]  ;;  %v764_v54 = vld [vmem:[%s3439_s3 + $0x500] sm:$0xff] }
  0xc0   :  { %807 = vmatpush.msra.mxu0 %v616_v55  ;;  %827 = vmatpush.msra.mxu1 %v664_v56  ;;  %v620_v55 = vld [vmem:[%s3439_s3 + $0x80] sm:$0xff] }
  0xc1   :  { %849 = vmatpush.msra.mxu2 %v706_v57  ;;  %868 = vmatpush.msra.mxu3 %v757_v58  ;;  %v668_v56 = vld [vmem:[%s3439_s3 + $0x200] sm:$0xff]  ;;  %v710_v57 = vld [vmem:[%s3439_s3 + $0x350] sm:$0xff]  ;;  %v761_v58 = vld [vmem:[%s3439_s3 + $0x4e8] sm:$0xff] }
  0xc2   :  { %808 = vmatpush.msra.mxu0 %v613_v59  ;;  %828 = vmatpush.msra.mxu1 %v661_v61  ;;  %v617_v59 = vld [vmem:[%s3439_s3 + $0x68] sm:$0xff] }
  0xc3   :  { %850 = vmatpush.msra.mxu2 %v703_v62  ;;  %869 = vmatpush.msra.mxu3 %v754_v63  ;;  %v665_v61 = vld [vmem:[%s3439_s3 + $0x1e8] sm:$0xff]  ;;  %v707_v62 = vld [vmem:[%s3439_s3 + $0x338] sm:$0xff]  ;;  %v758_v63 = vld [vmem:[%s3439_s3 + $0x4d0] sm:$0xff] }
  0xc4   :  { %809 = vmatpush.msra.mxu0 %v610_v1  ;;  %829 = vmatpush.msra.mxu1 %v658_v2  ;;  %v614_v1 = vld [vmem:[%s3439_s3 + $0x50] sm:$0xff] }
  0xc5   :  { %851 = vmatpush.msra.mxu2 %v700_v3  ;;  %870 = vmatpush.msra.mxu3 %v751_v4  ;;  %v662_v2 = vld [vmem:[%s3439_s3 + $0x1d0] sm:$0xff]  ;;  %v704_v3 = vld [vmem:[%s3439_s3 + $0x320] sm:$0xff]  ;;  %v755_v4 = vld [vmem:[%s3439_s3 + $0x4b8] sm:$0xff] }
  0xc6   :  { %852 = vmatmul.f32.vlgmr.msra.gmra.mxu2 %v2520_v7  ;;  %810 = vmatpush.msra.mxu0 %v607_v9  ;;  %v659_v9 = vld [vmem:[%s3439_s3 + $0x1b8] sm:$0xff] }
  0xc7   :  { %916 = vmatpush.msrb.mxu2 %v746_v8  ;;  %830 = vmatpush.msra.mxu1 %v655_v10  ;;  %v611_v8 = vld [vmem:[%s3439_s3 + $0x38] sm:$0xff]  ;;  %v701_v10 = vld [vmem:[%s3439_s3 + $0x308] sm:$0xff] }
  0xc8   :  { %871 = vmatpush.msra.mxu3 %v748_v11  ;;  %811 = vmatpush.msra.mxu0 %v604_v14  ;;  %v752_v11 = vld [vmem:[%s3439_s3 + $0x4a0] sm:$0xff] }
  0xc9   :  { %872 = vmatmul.f32.vlgmr.msra.gmra.mxu3 %v2538_v12  ;;  %917 = vmatpush.msrb.mxu2 %v743_v13  ;;  %v747_v13 = vld [vmem:[%s3439_s3 + $0x478] sm:$0xff]  ;;  %v656_v14 = vld [vmem:[%s3439_s3 + $0x1a0] sm:$0xff] }
  0xca   :  { %936 = vmatpush.msrb.mxu3 %v794_v60  ;;  %831 = vmatpush.msra.mxu1 %v652_v15  ;;  %v608_v60 = vld [vmem:[%s3439_s3 + $0x20] sm:$0xff]  ;;  %v749_v15 = vld [vmem:[%s3439_s3 + $0x488] sm:$0xff] }
  0xcb   :  { %812 = vmatmul.f32.vlgmr.msra.gmra.mxu0 %v2555_v16  ;;  %832 = vmatmul.f32.vlgmr.msra.gmra.mxu1 %v2561_v0 }
  0xcc   :  { %876 = vmatpush.msrb.mxu0 %v650_v17  ;;  %896 = vmatpush.msrb.mxu1 %v698_v18  ;;  %v744_v17 = vld [vmem:[%s3439_s3 + $0x460] sm:$0xff]  ;;  %v795_v18 = vld [vmem:[%s3439_s3 + $0x5f8] sm:$0xff] }
  0xcd   :  { %918 = vmatpush.msrb.mxu2 %v740_v19  ;;  %937 = vmatpush.msrb.mxu3 %v791_v5  ;;  %v605_v19 = vld [vmem:[%s3439_s3 + $0x8] sm:$0xff] }
  0xce   :  { %877 = vmatpush.msrb.mxu0 %v647_v20  ;;  %897 = vmatpush.msrb.mxu1 %v695_v6  ;;  %v653_v5 = vld [vmem:[%s3439_s3 + $0x188] sm:$0xff]  ;;  %v651_v20 = vld [vmem:[%s3439_s3 + $0x178] sm:$0xff] }
  0xcf   :  { %919 = vmatpush.msrb.mxu2 %v737_v21  ;;  %938 = vmatpush.msrb.mxu3 %v788_v22  ;;  %v699_v6 = vld [vmem:[%s3439_s3 + $0x2f8] sm:$0xff]  ;;  %v741_v21 = vld [vmem:[%s3439_s3 + $0x448] sm:$0xff]  ;;  %v792_v22 = vld [vmem:[%s3439_s3 + $0x5e0] sm:$0xff] }
  0xd0   :  { %878 = vmatpush.msrb.mxu0 %v644_v23  ;;  %898 = vmatpush.msrb.mxu1 %v692_v24  ;;  %v648_v23 = vld [vmem:[%s3439_s3 + $0x160] sm:$0xff] }
  0xd1   :  { %920 = vmatpush.msrb.mxu2 %v734_v25  ;;  %939 = vmatpush.msrb.mxu3 %v785_v26  ;;  %v696_v24 = vld [vmem:[%s3439_s3 + $0x2e0] sm:$0xff]  ;;  %v738_v25 = vld [vmem:[%s3439_s3 + $0x430] sm:$0xff]  ;;  %v789_v26 = vld [vmem:[%s3439_s3 + $0x5c8] sm:$0xff] }
  0xd2   :  { %879 = vmatpush.msrb.mxu0 %v641_v27  ;;  %899 = vmatpush.msrb.mxu1 %v689_v28  ;;  %v645_v27 = vld [vmem:[%s3439_s3 + $0x148] sm:$0xff] }
  0xd3   :  { %921 = vmatpush.msrb.mxu2 %v731_v29  ;;  %940 = vmatpush.msrb.mxu3 %v782_v30  ;;  %v693_v28 = vld [vmem:[%s3439_s3 + $0x2c8] sm:$0xff]  ;;  %v735_v29 = vld [vmem:[%s3439_s3 + $0x418] sm:$0xff]  ;;  %v786_v30 = vld [vmem:[%s3439_s3 + $0x5b0] sm:$0xff] }
  0xd4   :  { %880 = vmatpush.msrb.mxu0 %v638_v31  ;;  %900 = vmatpush.msrb.mxu1 %v686_v32  ;;  %v642_v31 = vld [vmem:[%s3439_s3 + $0x130] sm:$0xff] }
  0xd5   :  { %922 = vmatpush.msrb.mxu2 %v728_v33  ;;  %941 = vmatpush.msrb.mxu3 %v779_v34  ;;  %v690_v32 = vld [vmem:[%s3439_s3 + $0x2b0] sm:$0xff]  ;;  %v732_v33 = vld [vmem:[%s3439_s3 + $0x400] sm:$0xff]  ;;  %v783_v34 = vld [vmem:[%s3439_s3 + $0x598] sm:$0xff] }
  0xd6   :  { %881 = vmatpush.msrb.mxu0 %v635_v35  ;;  %901 = vmatpush.msrb.mxu1 %v683_v36  ;;  %v639_v35 = vld [vmem:[%s3439_s3 + $0x118] sm:$0xff] }
  0xd7   :  { %923 = vmatpush.msrb.mxu2 %v725_v37  ;;  %942 = vmatpush.msrb.mxu3 %v776_v38  ;;  %v687_v36 = vld [vmem:[%s3439_s3 + $0x298] sm:$0xff]  ;;  %v729_v37 = vld [vmem:[%s3439_s3 + $0x3e8] sm:$0xff]  ;;  %v780_v38 = vld [vmem:[%s3439_s3 + $0x580] sm:$0xff] }
  0xd8   :  { %882 = vmatpush.msrb.mxu0 %v632_v39  ;;  %902 = vmatpush.msrb.mxu1 %v680_v40  ;;  %v636_v39 = vld [vmem:[%s3439_s3 + $0x100] sm:$0xff] }
  0xd9   :  { %924 = vmatpush.msrb.mxu2 %v722_v41  ;;  %943 = vmatpush.msrb.mxu3 %v773_v42  ;;  %v684_v40 = vld [vmem:[%s3439_s3 + $0x280] sm:$0xff]  ;;  %v726_v41 = vld [vmem:[%s3439_s3 + $0x3d0] sm:$0xff]  ;;  %v777_v42 = vld [vmem:[%s3439_s3 + $0x568] sm:$0xff] }
  0xda   :  { %883 = vmatpush.msrb.mxu0 %v629_v43  ;;  %903 = vmatpush.msrb.mxu1 %v677_v44  ;;  %v633_v43 = vld [vmem:[%s3439_s3 + $0xe8] sm:$0xff] }
  0xdb   :  { %925 = vmatpush.msrb.mxu2 %v719_v45  ;;  %944 = vmatpush.msrb.mxu3 %v770_v46  ;;  %v681_v44 = vld [vmem:[%s3439_s3 + $0x268] sm:$0xff]  ;;  %v723_v45 = vld [vmem:[%s3439_s3 + $0x3b8] sm:$0xff]  ;;  %v774_v46 = vld [vmem:[%s3439_s3 + $0x550] sm:$0xff] }
  0xdc   :  { %884 = vmatpush.msrb.mxu0 %v626_v47  ;;  %904 = vmatpush.msrb.mxu1 %v674_v48  ;;  %v630_v47 = vld [vmem:[%s3439_s3 + $0xd0] sm:$0xff] }
  0xdd   :  { %926 = vmatpush.msrb.mxu2 %v716_v49  ;;  %945 = vmatpush.msrb.mxu3 %v767_v50  ;;  %v678_v48 = vld [vmem:[%s3439_s3 + $0x250] sm:$0xff]  ;;  %v720_v49 = vld [vmem:[%s3439_s3 + $0x3a0] sm:$0xff]  ;;  %v771_v50 = vld [vmem:[%s3439_s3 + $0x538] sm:$0xff] }
  0xde   :  { %885 = vmatpush.msrb.mxu0 %v623_v51  ;;  %905 = vmatpush.msrb.mxu1 %v671_v52  ;;  %v627_v51 = vld [vmem:[%s3439_s3 + $0xb8] sm:$0xff] }
  0xdf   :  { %927 = vmatpush.msrb.mxu2 %v713_v53  ;;  %946 = vmatpush.msrb.mxu3 %v764_v54  ;;  %v675_v52 = vld [vmem:[%s3439_s3 + $0x238] sm:$0xff]  ;;  %v717_v53 = vld [vmem:[%s3439_s3 + $0x388] sm:$0xff]  ;;  %v768_v54 = vld [vmem:[%s3439_s3 + $0x520] sm:$0xff] }
  0xe0   :  { %886 = vmatpush.msrb.mxu0 %v620_v55  ;;  %906 = vmatpush.msrb.mxu1 %v668_v56  ;;  %v624_v55 = vld [vmem:[%s3439_s3 + $0xa0] sm:$0xff] }
  0xe1   :  { %928 = vmatpush.msrb.mxu2 %v710_v57  ;;  %947 = vmatpush.msrb.mxu3 %v761_v58  ;;  %v672_v56 = vld [vmem:[%s3439_s3 + $0x220] sm:$0xff]  ;;  %v714_v57 = vld [vmem:[%s3439_s3 + $0x370] sm:$0xff]  ;;  %v765_v58 = vld [vmem:[%s3439_s3 + $0x508] sm:$0xff] }
  0xe2   :  { %887 = vmatpush.msrb.mxu0 %v617_v59  ;;  %907 = vmatpush.msrb.mxu1 %v665_v61  ;;  %v621_v59 = vld [vmem:[%s3439_s3 + $0x88] sm:$0xff] }
  0xe3   :  { %929 = vmatpush.msrb.mxu2 %v707_v62  ;;  %948 = vmatpush.msrb.mxu3 %v758_v63  ;;  %v669_v61 = vld [vmem:[%s3439_s3 + $0x208] sm:$0xff]  ;;  %v711_v62 = vld [vmem:[%s3439_s3 + $0x358] sm:$0xff]  ;;  %v762_v63 = vld [vmem:[%s3439_s3 + $0x4f0] sm:$0xff] }
  0xe4   :  { %888 = vmatpush.msrb.mxu0 %v614_v1  ;;  %908 = vmatpush.msrb.mxu1 %v662_v2  ;;  %v618_v1 = vld [vmem:[%s3439_s3 + $0x70] sm:$0xff] }
  0xe5   :  { %930 = vmatpush.msrb.mxu2 %v704_v3  ;;  %949 = vmatpush.msrb.mxu3 %v755_v4  ;;  %v666_v2 = vld [vmem:[%s3439_s3 + $0x1f0] sm:$0xff]  ;;  %v708_v3 = vld [vmem:[%s3439_s3 + $0x340] sm:$0xff]  ;;  %v759_v4 = vld [vmem:[%s3439_s3 + $0x4d8] sm:$0xff] }
  0xe6   :  { %889 = vmatpush.msrb.mxu0 %v611_v8  ;;  %909 = vmatpush.msrb.mxu1 %v659_v9  ;;  %v615_v8 = vld [vmem:[%s3439_s3 + $0x58] sm:$0xff] }
  0xe7   :  { %931 = vmatpush.msrb.mxu2 %v701_v10  ;;  %950 = vmatpush.msrb.mxu3 %v752_v11  ;;  %v663_v9 = vld [vmem:[%s3439_s3 + $0x1d8] sm:$0xff]  ;;  %v705_v10 = vld [vmem:[%s3439_s3 + $0x328] sm:$0xff]  ;;  %v756_v11 = vld [vmem:[%s3439_s3 + $0x4c0] sm:$0xff] }
  0xe8   :  { %932 = vmatmul.f32.vlgmr.msrb.gmra.mxu2 %v2520_v7  ;;  %890 = vmatpush.msrb.mxu0 %v608_v60  ;;  %v660_v60 = vld [vmem:[%s3439_s3 + $0x1c0] sm:$0xff] }
  0xe9   :  { %996 = vmatpush.msra.mxu2 %v747_v13  ;;  %910 = vmatpush.msrb.mxu1 %v656_v14  ;;  %v612_v13 = vld [vmem:[%s3439_s3 + $0x40] sm:$0xff]  ;;  %v702_v14 = vld [vmem:[%s3439_s3 + $0x310] sm:$0xff] }
  0xea   :  { %951 = vmatpush.msrb.mxu3 %v749_v15  ;;  %891 = vmatpush.msrb.mxu0 %v605_v19  ;;  %v753_v15 = vld [vmem:[%s3439_s3 + $0x4a8] sm:$0xff]  ;;  %v750_v19 = vld [vmem:[%s3439_s3 + $0x490] sm:$0xff] }
  0xeb   :  { %952 = vmatmul.f32.vlgmr.msrb.gmra.mxu3 %v2538_v12  ;;  %997 = vmatpush.msra.mxu2 %v744_v17  ;;  %v609_v17 = vld [vmem:[%s3439_s3 + $0x28] sm:$0xff] }
  0xec   :  { %1016 = vmatpush.msra.mxu3 %v795_v18  ;;  %911 = vmatpush.msrb.mxu1 %v653_v5  ;;  %v657_v18 = vld [vmem:[%s3439_s3 + $0x1a8] sm:$0xff]  ;;  %v606_v5 = vld [vmem:[%s3439_s3 + $0x10] sm:$0xff] }
  0xed   :  { %892 = vmatmul.f32.vlgmr.msrb.gmra.mxu0 %v2555_v16  ;;  %912 = vmatmul.f32.vlgmr.msrb.gmra.mxu1 %v2561_v0 }
  0xee   :  { %956 = vmatpush.msra.mxu0 %v651_v20  ;;  %976 = vmatpush.msra.mxu1 %v699_v6  ;;  %v654_v20 = vld [vmem:[%s3439_s3 + $0x190] sm:$0xff] }
  0xef   :  { %998 = vmatpush.msra.mxu2 %v741_v21  ;;  %1017 = vmatpush.msra.mxu3 %v792_v22  ;;  %v1452_v6 = vld [vmem:[%s3441_s4 + $0x2d0] sm:$0xff]  ;;  %v1453_v22 = vld [vmem:[%s3441_s4 + $0x2d8] sm:$0xff] }
  0xf0   :  { %957 = vmatpush.msra.mxu0 %v648_v23  ;;  %977 = vmatpush.msra.mxu1 %v696_v24  ;;  %v1456_v21 = vld [vmem:[%s3441_s4 + $0x2f0] sm:$0xff]  ;;  %v1454_v23 = vld [vmem:[%s3441_s4 + $0x2e0] sm:$0xff] }
  0xf1   :  { %999 = vmatpush.msra.mxu2 %v738_v25  ;;  %1018 = vmatpush.msra.mxu3 %v789_v26  ;;  %v1116_v24 = vld [vmem:[%s3441_s4 + $0x150] sm:$0xff]  ;;  %v1446_v25 = vld [vmem:[%s3441_s4 + $0x2a0] sm:$0xff]  ;;  %v1443_v26 = vld [vmem:[%s3441_s4 + $0x288] sm:$0xff] }
  0xf2   :  { %958 = vmatpush.msra.mxu0 %v645_v27  ;;  %978 = vmatpush.msra.mxu1 %v693_v28  ;;  %v1440_v27 = vld [vmem:[%s3441_s4 + $0x270] sm:$0xff]  ;;  %v1437_v28 = vld [vmem:[%s3441_s4 + $0x258] sm:$0xff] }
  0xf3   :  { %1000 = vmatpush.msra.mxu2 %v735_v29  ;;  %1019 = vmatpush.msra.mxu3 %v786_v30  ;;  %v1450_v29 = vld [vmem:[%s3441_s4 + $0x2c0] sm:$0xff]  ;;  %v1451_v30 = vld [vmem:[%s3441_s4 + $0x2c8] sm:$0xff] }
  0xf4   :  { %959 = vmatpush.msra.mxu0 %v642_v31  ;;  %979 = vmatpush.msra.mxu1 %v690_v32  ;;  %v1113_v31 = vld [vmem:[%s3441_s4 + $0x138] sm:$0xff]  ;;  %v1434_v32 = vld [vmem:[%s3441_s4 + $0x240] sm:$0xff] }
  0xf5   :  { %1001 = vmatpush.msra.mxu2 %v732_v33  ;;  %1020 = vmatpush.msra.mxu3 %v783_v34  ;;  %v1447_v33 = vld [vmem:[%s3441_s4 + $0x2a8] sm:$0xff]  ;;  %v1448_v34 = vld [vmem:[%s3441_s4 + $0x2b0] sm:$0xff] }
  0xf6   :  { %960 = vmatpush.msra.mxu0 %v639_v35  ;;  %980 = vmatpush.msra.mxu1 %v687_v36  ;;  %v1110_v35 = vld [vmem:[%s3441_s4 + $0x120] sm:$0xff]  ;;  %v1431_v36 = vld [vmem:[%s3441_s4 + $0x228] sm:$0xff] }
  0xf7   :  { %1002 = vmatpush.msra.mxu2 %v729_v37  ;;  %1021 = vmatpush.msra.mxu3 %v780_v38  ;;  %v1444_v37 = vld [vmem:[%s3441_s4 + $0x290] sm:$0xff]  ;;  %v1445_v38 = vld [vmem:[%s3441_s4 + $0x298] sm:$0xff] }
  0xf8   :  { %961 = vmatpush.msra.mxu0 %v636_v39  ;;  %981 = vmatpush.msra.mxu1 %v684_v40  ;;  %v1107_v39 = vld [vmem:[%s3441_s4 + $0x108] sm:$0xff]  ;;  %v1428_v40 = vld [vmem:[%s3441_s4 + $0x210] sm:$0xff] }
  0xf9   :  { %1003 = vmatpush.msra.mxu2 %v726_v41  ;;  %1022 = vmatpush.msra.mxu3 %v777_v42  ;;  %v1441_v41 = vld [vmem:[%s3441_s4 + $0x278] sm:$0xff]  ;;  %v1442_v42 = vld [vmem:[%s3441_s4 + $0x280] sm:$0xff] }
  0xfa   :  { %962 = vmatpush.msra.mxu0 %v633_v43  ;;  %982 = vmatpush.msra.mxu1 %v681_v44  ;;  %v1104_v43 = vld [vmem:[%s3441_s4 + $0xf0] sm:$0xff]  ;;  %v1425_v44 = vld [vmem:[%s3441_s4 + $0x1f8] sm:$0xff] }
  0xfb   :  { %1004 = vmatpush.msra.mxu2 %v723_v45  ;;  %1023 = vmatpush.msra.mxu3 %v774_v46  ;;  %v1438_v45 = vld [vmem:[%s3441_s4 + $0x260] sm:$0xff]  ;;  %v1439_v46 = vld [vmem:[%s3441_s4 + $0x268] sm:$0xff] }
  0xfc   :  { %963 = vmatpush.msra.mxu0 %v630_v47  ;;  %983 = vmatpush.msra.mxu1 %v678_v48  ;;  %v1101_v47 = vld [vmem:[%s3441_s4 + $0xd8] sm:$0xff]  ;;  %v1422_v48 = vld [vmem:[%s3441_s4 + $0x1e0] sm:$0xff] }
  0xfd   :  { %1005 = vmatpush.msra.mxu2 %v720_v49  ;;  %1024 = vmatpush.msra.mxu3 %v771_v50  ;;  %v1435_v49 = vld [vmem:[%s3441_s4 + $0x248] sm:$0xff]  ;;  %v3050_v50 = vpop.f32.mrf.mxu0 }
  0xfe   :  { %964 = vmatpush.msra.mxu0 %v627_v51  ;;  %984 = vmatpush.msra.mxu1 %v675_v52  ;;  %v3052_v51 = vpop.f32.mrf.mxu1  ;;  %v1436_v52 = vld [vmem:[%s3441_s4 + $0x250] sm:$0xff] }
  0xff   :  { %1006 = vmatpush.msra.mxu2 %v717_v53  ;;  %1025 = vmatpush.msra.mxu3 %v768_v54  ;;  %v1098_v53 = vld [vmem:[%s3441_s4 + $0xc0] sm:$0xff]  ;;  %v1419_v54 = vld [vmem:[%s3441_s4 + $0x1c8] sm:$0xff] }
 0x100   :  { %965 = vmatpush.msra.mxu0 %v624_v55  ;;  %985 = vmatpush.msra.mxu1 %v672_v56  ;;  %v1432_v55 = vld [vmem:[%s3441_s4 + $0x230] sm:$0xff]  ;;  %v1433_v56 = vld [vmem:[%s3441_s4 + $0x238] sm:$0xff] }
 0x101   :  { %1007 = vmatpush.msra.mxu2 %v714_v57  ;;  %1026 = vmatpush.msra.mxu3 %v765_v58  ;;  %v1095_v57 = vld [vmem:[%s3441_s4 + $0xa8] sm:$0xff]  ;;  %v1416_v58 = vld [vmem:[%s3441_s4 + $0x1b0] sm:$0xff] }
 0x102   :  { %966 = vmatpush.msra.mxu0 %v621_v59  ;;  %986 = vmatpush.msra.mxu1 %v669_v61  ;;  %v1429_v59 = vld [vmem:[%s3441_s4 + $0x218] sm:$0xff]  ;;  %v1430_v61 = vld [vmem:[%s3441_s4 + $0x220] sm:$0xff] }
 0x103   :  { %1008 = vmatpush.msra.mxu2 %v711_v62  ;;  %1027 = vmatpush.msra.mxu3 %v762_v63  ;;  %v3081_v62 = vpop.f32.mrf.mxu2  ;;  %v1092_v63 = vld [vmem:[%s3441_s4 + $0x90] sm:$0xff] }
 0x104   :  { %967 = vmatpush.msra.mxu0 %v618_v1  ;;  %987 = vmatpush.msra.mxu1 %v666_v2  ;;  %v1413_v1 = vld [vmem:[%s3441_s4 + $0x198] sm:$0xff]  ;;  %v1426_v2 = vld [vmem:[%s3441_s4 + $0x200] sm:$0xff] }
 0x105   :  { %1009 = vmatpush.msra.mxu2 %v708_v3  ;;  %1028 = vmatpush.msra.mxu3 %v759_v4  ;;  %v1427_v3 = vld [vmem:[%s3441_s4 + $0x208] sm:$0xff]  ;;  %v1089_v4 = vld [vmem:[%s3441_s4 + $0x78] sm:$0xff] }
 0x106   :  { %968 = vmatpush.msra.mxu0 %v615_v8  ;;  %988 = vmatpush.msra.mxu1 %v663_v9  ;;  %v1410_v8 = vld [vmem:[%s3441_s4 + $0x180] sm:$0xff]  ;;  %v3101_v9 = vpop.f32.mrf.mxu3 }
 0x107   :  { %1010 = vmatpush.msra.mxu2 %v705_v10  ;;  %1029 = vmatpush.msra.mxu3 %v756_v11  ;;  %v1423_v10 = vld [vmem:[%s3441_s4 + $0x1e8] sm:$0xff]  ;;  %v1424_v11 = vld [vmem:[%s3441_s4 + $0x1f0] sm:$0xff] }
 0x108   :  { %969 = vmatpush.msra.mxu0 %v612_v13  ;;  %989 = vmatpush.msra.mxu1 %v660_v60  ;;  %v3109_v13 = vpop.f32.mrf.mxu0  ;;  %v3111_v60 = vpop.f32.mrf.mxu1 }
 0x109   :  { %1011 = vmatpush.msra.mxu2 %v702_v14  ;;  %1030 = vmatpush.msra.mxu3 %v753_v15  ;;  %v1086_v14 = vld [vmem:[%s3441_s4 + $0x60] sm:$0xff]  ;;  %v1120_v15 = vld [vmem:[%s3441_s4 + $0x170] sm:$0xff] }
 0x10a   :  { %1012 = vmatmul.f32.vlgmr.msra.gmra.mxu2 %v2520_v7  ;;  %970 = vmatpush.msra.mxu0 %v609_v17  ;;  %v1455_v7 = vld [vmem:[%s3441_s4 + $0x2e8] sm:$0xff]  ;;  %v1420_v17 = vld [vmem:[%s3441_s4 + $0x1d0] sm:$0xff] }
 0x10b   :  { %990 = vmatpush.msra.mxu1 %v657_v18  ;;  %1031 = vmatpush.msra.mxu3 %v750_v19  ;;  %v1421_v18 = vld [vmem:[%s3441_s4 + $0x1d8] sm:$0xff]  ;;  %v1083_v19 = vld [vmem:[%s3441_s4 + $0x48] sm:$0xff] }
 0x10c   :  { %1032 = vmatmul.f32.vlgmr.msra.gmra.mxu3 %v2538_v12  ;;  %971 = vmatpush.msra.mxu0 %v606_v5  ;;  %v1449_v12 = vld [vmem:[%s3441_s4 + $0x2b8] sm:$0xff] }
 0x10d   :  { %991 = vmatpush.msra.mxu1 %v654_v20  ;;  %972 = vmatmul.f32.vlgmr.msra.gmra.mxu0 %v2555_v16  ;;  %v1457_v16 = vld [vmem:[%s3441_s4 + $0x2f8] sm:$0xff] }
 0x10e   :  { %992 = vmatmul.f32.vlgmr.msra.gmra.mxu1 %v2561_v0  ;;  %1171 = vmatpush.msrb.mxu0 %v1455_v7  ;;  %v1119_v0 = vld [vmem:[%s3441_s4 + $0x168] sm:$0xff]  ;;  %v1117_v5 = vld [vmem:[%s3441_s4 + $0x158] sm:$0xff]  ;;  %v1418_v7 = vld [vmem:[%s3441_s4 + $0x1c0] sm:$0xff] }
 0x10f   :  { %1191 = vmatpush.msrb.mxu1 %v1456_v21  ;;  %1211 = vmatpush.msrb.mxu2 %v1457_v16  ;;  %v1417_v20 = vld [vmem:[%s3441_s4 + $0x1b8] sm:$0xff]  ;;  %v1080_v21 = vld [vmem:[%s3441_s4 + $0x30] sm:$0xff]  ;;  %v1414_v16 = vld [vmem:[%s3441_s4 + $0x1a0] sm:$0xff] }
 0x110   :  { %1172 = vmatpush.msrb.mxu0 %v1452_v6  ;;  %1231 = vmatpush.msrb.mxu3 %v1119_v0  ;;  %v3137_v6 = vpop.f32.mrf.mxu2  ;;  %v1415_v0 = vld [vmem:[%s3441_s4 + $0x1a8] sm:$0xff] }
 0x111   :  { %1192 = vmatpush.msrb.mxu1 %v1453_v22  ;;  %1212 = vmatpush.msrb.mxu2 %v1454_v23  ;;  %v1077_v22 = vld [vmem:[%s3441_s4 + $0x18] sm:$0xff]  ;;  %v1111_v23 = vld [vmem:[%s3441_s4 + $0x128] sm:$0xff] }
 0x112   :  { %1173 = vmatpush.msrb.mxu0 %v1449_v12  ;;  %1232 = vmatpush.msrb.mxu3 %v1116_v24  ;;  %v1114_v12 = vld [vmem:[%s3441_s4 + $0x140] sm:$0xff]  ;;  %v3157_v24 = vpop.f32.mrf.mxu3 }
 0x113   :  { %1193 = vmatpush.msrb.mxu1 %v1450_v29  ;;  %1213 = vmatpush.msrb.mxu2 %v1451_v30  ;;  %v1121_v29 = vld [vmem:[%s3441_s4 + $0x178] sm:$0xff]  ;;  %v1503_v30 = vld [vmem:[%s3441_s4 + $0x468] sm:$0xff] }
 0x114   :  { %1174 = vmatpush.msrb.mxu0 %v1446_v25  ;;  %1233 = vmatpush.msrb.mxu3 %v1113_v31  ;;  %v1411_v25 = vld [vmem:[%s3441_s4 + $0x188] sm:$0xff]  ;;  %v3177_v31 = vpop.f32.mrf.mxu0 }
 0x115   :  { %1194 = vmatpush.msrb.mxu1 %v1447_v33  ;;  %1214 = vmatpush.msrb.mxu2 %v1448_v34  ;;  %v1504_v33 = vld [vmem:[%s3441_s4 + $0x470] sm:$0xff]  ;;  %v1105_v34 = vld [vmem:[%s3441_s4 + $0xf8] sm:$0xff] }
 0x116   :  { %1175 = vmatpush.msrb.mxu0 %v1443_v26  ;;  %1234 = vmatpush.msrb.mxu3 %v1110_v35  ;;  %v1412_v26 = vld [vmem:[%s3441_s4 + $0x190] sm:$0xff]  ;;  %v1118_v35 = vld [vmem:[%s3441_s4 + $0x160] sm:$0xff] }
 0x117   :  { %1195 = vmatpush.msrb.mxu1 %v1444_v37  ;;  %1215 = vmatpush.msrb.mxu2 %v1445_v38  ;;  %v1501_v37 = vld [vmem:[%s3441_s4 + $0x458] sm:$0xff]  ;;  %v1102_v38 = vld [vmem:[%s3441_s4 + $0xe0] sm:$0xff] }
 0x118   :  { %1176 = vmatpush.msrb.mxu0 %v1440_v27  ;;  %1235 = vmatpush.msrb.mxu3 %v1107_v39  ;;  %v1074_v27 = vld [vmem:[%s3441_s4] sm:$0xff]  ;;  %v1115_v39 = vld [vmem:[%s3441_s4 + $0x148] sm:$0xff] }
 0x119   :  { %1196 = vmatpush.msrb.mxu1 %v1441_v41  ;;  %1216 = vmatpush.msrb.mxu2 %v1442_v42  ;;  %v3205_v41 = vpop.f32.mrf.mxu2  ;;  %v1498_v42 = vld [vmem:[%s3441_s4 + $0x440] sm:$0xff] }
 0x11a   :  { %1177 = vmatpush.msrb.mxu0 %v1437_v28  ;;  %1236 = vmatpush.msrb.mxu3 %v1104_v43  ;;  %v1108_v28 = vld [vmem:[%s3441_s4 + $0x110] sm:$0xff]  ;;  %v1099_v43 = vld [vmem:[%s3441_s4 + $0xc8] sm:$0xff] }
 0x11b   :  { %1197 = vmatpush.msrb.mxu1 %v1438_v45  ;;  %1217 = vmatpush.msrb.mxu2 %v1439_v46  ;;  %v1494_v45 = vld [vmem:[%s3441_s4 + $0x420] sm:$0xff]  ;;  %v1495_v46 = vld [vmem:[%s3441_s4 + $0x428] sm:$0xff] }
 0x11c   :  { %1178 = vmatpush.msrb.mxu0 %v1434_v32  ;;  %1237 = vmatpush.msrb.mxu3 %v1101_v47  ;;  %v3179_v32 = vpop.f32.mrf.mxu1  ;;  %v3222_v47 = vpop.f32.mrf.mxu3 }
 0x11d   :  { %1198 = vmatpush.msrb.mxu1 %v1435_v49  ;;  %1218 = vmatpush.msrb.mxu2 %v1436_v52  ;;  %v1109_v49 = vld [vmem:[%s3441_s4 + $0x118] sm:$0xff] }
 0x11e   :  { %1179 = vmatpush.msrb.mxu0 %v1431_v36  ;;  %1238 = vmatpush.msrb.mxu3 %v1098_v53  ;;  %v1500_v36 = vld [vmem:[%s3441_s4 + $0x450] sm:$0xff] }
 0x11f   :  { %1199 = vmatpush.msrb.mxu1 %v1432_v55  ;;  %1219 = vmatpush.msrb.mxu2 %v1433_v56  ;;  %v1492_v55 = vld [vmem:[%s3441_s4 + $0x410] sm:$0xff]  ;;  %v1093_v56 = vld [vmem:[%s3441_s4 + $0x98] sm:$0xff] }
 0x120   :  { %1180 = vmatpush.msrb.mxu0 %v1428_v40  ;;  %1239 = vmatpush.msrb.mxu3 %v1095_v57  ;;  %v1497_v40 = vld [vmem:[%s3441_s4 + $0x438] sm:$0xff]  ;;  %v1106_v57 = vld [vmem:[%s3441_s4 + $0x100] sm:$0xff] }
 0x121   :  { %1200 = vmatpush.msrb.mxu1 %v1429_v59  ;;  %1220 = vmatpush.msrb.mxu2 %v1430_v61  ;;  %v1489_v59 = vld [vmem:[%s3441_s4 + $0x3f8] sm:$0xff]  ;;  %v1090_v61 = vld [vmem:[%s3441_s4 + $0x80] sm:$0xff] }
 0x122   :  { %1181 = vmatpush.msrb.mxu0 %v1425_v44  ;;  %1240 = vmatpush.msrb.mxu3 %v1092_v63  ;;  %v1112_v44 = vld [vmem:[%s3441_s4 + $0x130] sm:$0xff]  ;;  %v1103_v63 = vld [vmem:[%s3441_s4 + $0xe8] sm:$0xff] }
 0x123   :  { %1201 = vmatpush.msrb.mxu1 %v1426_v2  ;;  %1221 = vmatpush.msrb.mxu2 %v1427_v3  ;;  %v1485_v2 = vld [vmem:[%s3441_s4 + $0x3d8] sm:$0xff]  ;;  %v1486_v3 = vld [vmem:[%s3441_s4 + $0x3e0] sm:$0xff] }
 0x124   :  { %1182 = vmatpush.msrb.mxu0 %v1422_v48  ;;  %1241 = vmatpush.msrb.mxu3 %v1089_v4  ;;  %v1096_v48 = vld [vmem:[%s3441_s4 + $0xb0] sm:$0xff]  ;;  %v1087_v4 = vld [vmem:[%s3441_s4 + $0x68] sm:$0xff] }
 0x125   :  { %1202 = vmatpush.msrb.mxu1 %v1423_v10  ;;  %1222 = vmatpush.msrb.mxu2 %v1424_v11  ;;  %v1482_v10 = vld [vmem:[%s3441_s4 + $0x3c0] sm:$0xff]  ;;  %v1483_v11 = vld [vmem:[%s3441_s4 + $0x3c8] sm:$0xff] }
 0x126   :  { %1183 = vmatpush.msrb.mxu0 %v1419_v54  ;;  %1242 = vmatpush.msrb.mxu3 %v1086_v14  ;;  %v3230_v52 = vpop.f32.mrf.mxu0  ;;  %v3232_v53 = vpop.f32.mrf.mxu1  ;;  %v1491_v54 = vld [vmem:[%s3441_s4 + $0x408] sm:$0xff] }
 0x127   :  { %1203 = vmatpush.msrb.mxu1 %v1420_v17  ;;  %1223 = vmatpush.msrb.mxu2 %v1421_v18  ;;  %v1097_v17 = vld [vmem:[%s3441_s4 + $0xb8] sm:$0xff] }
 0x128   :  { %1184 = vmatpush.msrb.mxu0 %v1416_v58  ;;  %1243 = vmatpush.msrb.mxu3 %v1083_v19  ;;  %v1488_v58 = vld [vmem:[%s3441_s4 + $0x3f0] sm:$0xff] }
 0x129   :  { %1204 = vmatpush.msrb.mxu1 %v1417_v20  ;;  %1224 = vmatpush.msrb.mxu2 %v1418_v7  ;;  %v1480_v20 = vld [vmem:[%s3441_s4 + $0x3b0] sm:$0xff]  ;;  %v1081_v7 = vld [vmem:[%s3441_s4 + $0x38] sm:$0xff] }
 0x12a   :  { %1185 = vmatpush.msrb.mxu0 %v1413_v1  ;;  %1244 = vmatpush.msrb.mxu3 %v1080_v21  ;;  %v3258_v1 = vpop.f32.mrf.mxu2  ;;  %v3278_v14 = vpop.f32.mrf.mxu3  ;;  %v1094_v21 = vld [vmem:[%s3441_s4 + $0xa0] sm:$0xff] }
 0x12b   :  { %1205 = vmatpush.msrb.mxu1 %v1414_v16  ;;  %1225 = vmatpush.msrb.mxu2 %v1415_v0  ;;  %v1477_v16 = vld [vmem:[%s3441_s4 + $0x398] sm:$0xff]  ;;  %v1078_v0 = vld [vmem:[%s3441_s4 + $0x20] sm:$0xff] }
 0x12c   :  { %1186 = vmatpush.msrb.mxu0 %v1410_v8  ;;  %1245 = vmatpush.msrb.mxu3 %v1077_v22  ;;  %v1100_v8 = vld [vmem:[%s3441_s4 + $0xd0] sm:$0xff]  ;;  %v1091_v22 = vld [vmem:[%s3441_s4 + $0x88] sm:$0xff] }
 0x12d   :  { %1206 = vmatpush.msrb.mxu1 %v1411_v25  ;;  %1226 = vmatpush.msrb.mxu2 %v1412_v26  ;;  %v1473_v25 = vld [vmem:[%s3441_s4 + $0x378] sm:$0xff]  ;;  %v1474_v26 = vld [vmem:[%s3441_s4 + $0x380] sm:$0xff] }
 0x12e   :  { %1251 = vmatpush.msra.mxu0 %v1120_v15  ;;  %1246 = vmatpush.msrb.mxu3 %v1074_v27  ;;  %v1084_v15 = vld [vmem:[%s3441_s4 + $0x50] sm:$0xff]  ;;  %v1075_v27 = vld [vmem:[%s3441_s4 + $0x8] sm:$0xff] }
 0x12f   :  { %1271 = vmatpush.msra.mxu1 %v1121_v29  ;;  %1340 = vmatpush.msra.mxu2 %v1503_v30  ;;  %v1470_v29 = vld [vmem:[%s3441_s4 + $0x360] sm:$0xff]  ;;  %v1471_v30 = vld [vmem:[%s3441_s4 + $0x368] sm:$0xff] }
 0x130   :  { %1252 = vmatpush.msra.mxu0 %v1117_v5  ;;  %1360 = vmatpush.msra.mxu3 %v1504_v33  ;;  %v1479_v5 = vld [vmem:[%s3441_s4 + $0x3a8] sm:$0xff] }
 0x131   :  { %1272 = vmatpush.msra.mxu1 %v1118_v35  ;;  %1341 = vmatpush.msra.mxu2 %v1500_v36  ;;  %v482_v35 = vadd.f32 %v3179_v32, %v3177_v31  ;;  %v1082_v32 = vld [vmem:[%s3441_s4 + $0x40] sm:$0xff] }
 0x132   :  { %1253 = vmatpush.msra.mxu0 %v1114_v12  ;;  %1361 = vmatpush.msra.mxu3 %v1501_v37  ;;  %v1476_v12 = vld [vmem:[%s3441_s4 + $0x390] sm:$0xff] }
 0x133   :  { %1273 = vmatpush.msra.mxu1 %v1115_v39  ;;  %1342 = vmatpush.msra.mxu2 %v1497_v40  ;;  %v1467_v39 = vld [vmem:[%s3441_s4 + $0x348] sm:$0xff]  ;;  %v1464_v40 = vld [vmem:[%s3441_s4 + $0x330] sm:$0xff] }
 0x134   :  { %1254 = vmatpush.msra.mxu0 %v1111_v23  ;;  %1362 = vmatpush.msra.mxu3 %v1498_v42  ;;  %v1465_v42 = vld [vmem:[%s3441_s4 + $0x338] sm:$0xff] }
 0x135   :  { %1274 = vmatpush.msra.mxu1 %v1112_v44  ;;  %1343 = vmatpush.msra.mxu2 %v1494_v45  ;;  %v502_v44 = vadd.f32 %v3205_v41, %v482_v35 }
 0x136   :  { %1255 = vmatpush.msra.mxu0 %v1108_v28  ;;  %1363 = vmatpush.msra.mxu3 %v1495_v46  ;;  %v1088_v28 = vld [vmem:[%s3441_s4 + $0x70] sm:$0xff] }
 0x137   :  { %1275 = vmatpush.msra.mxu1 %v1109_v49  ;;  %1344 = vmatpush.msra.mxu2 %v1491_v54  ;;  %v1461_v49 = vld [vmem:[%s3441_s4 + $0x318] sm:$0xff]  ;;  %v1458_v54 = vld [vmem:[%s3441_s4 + $0x300] sm:$0xff] }
 0x138   :  { %1256 = vmatpush.msra.mxu0 %v1105_v34  ;;  %1364 = vmatpush.msra.mxu3 %v1492_v55  ;;  %v402_v34 = vadd.f32 %v3111_v60, %v3109_v13  ;;  %v1468_v13 = vld [vmem:[%s3441_s4 + $0x350] sm:$0xff]  ;;  %v562_v60 = vadd.f32 %v3232_v53, %v3230_v52  ;;  %v1462_v52 = vld [vmem:[%s3441_s4 + $0x320] sm:$0xff]  ;;  %v1459_v55 = vld [vmem:[%s3441_s4 + $0x308] sm:$0xff] }
 0x139   :  { %1276 = vmatpush.msra.mxu1 %v1106_v57  ;;  %1345 = vmatpush.msra.mxu2 %v1488_v58  ;;  %v1076_v53 = vld [vmem:[%s3441_s4 + $0x10] sm:$0xff]  ;;  %v522_v57 = vadd.f32 %v3222_v47, %v502_v44  ;;  %v1502_v44 = vld [vmem:[%s3441_s4 + $0x460] sm:$0xff] }
 0x13a   :  { %1257 = vmatpush.msra.mxu0 %v1102_v38  ;;  %1365 = vmatpush.msra.mxu3 %v1489_v59  ;;  %v1085_v38 = vld [vmem:[%s3441_s4 + $0x58] sm:$0xff]  ;;  %v322_v59 = vadd.f32 %v3052_v51, %v3050_v50 }
 0x13b   :  { %1277 = vmatpush.msra.mxu1 %v1103_v63  ;;  %1346 = vmatpush.msra.mxu2 %v1485_v2 }
 0x13c   :  { %1258 = vmatpush.msra.mxu0 %v1099_v43  ;;  %1366 = vmatpush.msra.mxu3 %v1486_v3  ;;  %v422_v43 = vadd.f32 %v3137_v6, %v402_v34  ;;  %v582_v6 = vadd.f32 %v3258_v1, %v562_v60 }
 0x13d   :  { %1278 = vmatpush.msra.mxu1 %v1100_v8  ;;  %1347 = vmatpush.msra.mxu2 %v1482_v10  ;;  %v342_v10 = vadd.f32 %v3081_v62, %v322_v59  ;;  %v1469_v59 = vld [vmem:[%s3441_s4 + $0x358] sm:$0xff] }
 0x13e   :  { %1259 = vmatpush.msra.mxu0 %v1096_v48  ;;  %1367 = vmatpush.msra.mxu3 %v1483_v11  ;;  %v1079_v48 = vld [vmem:[%s3441_s4 + $0x28] sm:$0xff]  ;;  %v602_v63 = vadd.f32 %v3278_v14, %v582_v6  ;;  %v1493_v6 = vld [vmem:[%s3441_s4 + $0x418] sm:$0xff] }
 0x13f   :  { %1279 = vmatpush.msra.mxu1 %v1097_v17  ;;  %1348 = vmatpush.msra.mxu2 %v1479_v5  ;;  %v362_v51 = vadd.f32 %v3101_v9, %v342_v10 }
 0x140   :  { %1260 = vmatpush.msra.mxu0 %v1093_v56  ;;  %1368 = vmatpush.msra.mxu3 %v1480_v20  ;;  %v442_v56 = vadd.f32 %v3157_v24, %v422_v43 }
 0x141   :  { %1280 = vmatpush.msra.mxu1 %v1094_v21  ;;  %1349 = vmatpush.msra.mxu2 %v1476_v12 }
 0x142   :  { %1261 = vmatpush.msra.mxu0 %v1090_v61  ;;  %1369 = vmatpush.msra.mxu3 %v1477_v16  ;;  %v1037_v3 = vmul.f32 %v442_v56, %v442_v56 }
 0x143   :  { %1281 = vmatpush.msra.mxu1 %v1091_v22  ;;  %1350 = vmatpush.msra.mxu2 %v1473_v25 }
 0x144   :  { %1262 = vmatpush.msra.mxu0 %v1087_v4  ;;  %1370 = vmatpush.msra.mxu3 %v1474_v26  ;;  %v1038_v4 = vmul.f32 %v522_v57, %v522_v57 }
 0x145   :  { %1282 = vmatpush.msra.mxu1 %v1088_v28  ;;  %1351 = vmatpush.msra.mxu2 %v1470_v29  ;;  %v1049_v29 = vmul.f32 2.0, %v362_v51 }
 0x146   :  { %1263 = vmatpush.msra.mxu0 %v1084_v15  ;;  %1371 = vmatpush.msra.mxu3 %v1471_v30  ;;  %v1040_v15 = vmul.f32 %v602_v63, %v602_v63 }
 0x147   :  { %1283 = vmatpush.msra.mxu1 %v1085_v38  ;;  %1352 = vmatpush.msra.mxu2 %v1467_v39 }
 0x148   :  { %v813_v18 = vpop.f32.mrf.mxu0  ;;  %v833_v19 = vpop.f32.mrf.mxu1  ;;  %1264 = vmatpush.msra.mxu0 %v1081_v7  ;;  %1372 = vmatpush.msra.mxu3 %v1468_v13 }
 0x149   :  { %v853_v23 = vpop.f32.mrf.mxu2  ;;  %1284 = vmatpush.msra.mxu1 %v1082_v32  ;;  %v834_v46 = vadd.f32 %v833_v19, %v813_v18  ;;  %1353 = vmatpush.msra.mxu2 %v1464_v40  ;;  %v1039_v19 = vadd.f32 %v1038_v4, %v1037_v3  ;;  %v1505_v32 = vld [vmem:[%s3441_s4 + $0x478] sm:$0xff] }
 0x14a   :  { %1265 = vmatpush.msra.mxu0 %v1078_v0  ;;  %1373 = vmatpush.msra.mxu3 %v1465_v42  ;;  %v1036_v0 = vmul.f32 %v362_v51, %v362_v51 }
 0x14b   :  { %1285 = vmatpush.msra.mxu1 %v1079_v48  ;;  %1354 = vmatpush.msra.mxu2 %v1461_v49  ;;  %v854_v61 = vadd.f32 %v853_v23, %v834_v46  ;;  %v1041_v14 = vadd.f32 %v1040_v15, %v1039_v19  ;;  %v1496_v48 = vld [vmem:[%s3441_s4 + $0x430] sm:$0xff] }
 0x14c   :  { %v873_v33 = vpop.f32.mrf.mxu3  ;;  %1266 = vmatpush.msra.mxu0 %v1075_v27  ;;  %1374 = vmatpush.msra.mxu3 %v1462_v52 }
 0x14d   :  { %1286 = vmatpush.msra.mxu1 %v1076_v53  ;;  %1355 = vmatpush.msra.mxu2 %v1458_v54  ;;  %v874_v24 = vadd.f32 %v873_v33, %v854_v61  ;;  %v1042_v25 = vsub.f32 %v1036_v0, %v1041_v14  ;;  %v1487_v53 = vld [vmem:[%s3441_s4 + $0x3e8] sm:$0xff]  ;;  %v1484_v54 = vld [vmem:[%s3441_s4 + $0x3d0] sm:$0xff]  ;;  %v1466_v61 = vld [vmem:[%s3441_s4 + $0x340] sm:$0xff] }
 0x14e   :  { %1375 = vmatpush.msra.mxu3 %v1459_v55  ;;  %v1481_v55 = vld [vmem:[%s3441_s4 + $0x3b8] sm:$0xff] }
 0x14f   :  { %v1043_v5 = vmul.f32 %v874_v24, %v442_v56  ;;  %v1061_v22 = vmul.f32 %v874_v24, %v602_v63  ;;  %v1050_v30 = vmul.f32 %v1042_v25, %v874_v24 }
 0x16a   :  { %v893_v36 = vpop.f32.mrf.mxu0  ;;  %v913_v37 = vpop.f32.mrf.mxu1 }
 0x16b   :  { %v914_v31 = vadd.f32 %v913_v37, %v893_v36  ;;  %v933_v45 = vpop.f32.mrf.mxu2 }
 0x16d   :  { %v934_v41 = vadd.f32 %v933_v45, %v914_v31  ;;  %v1070_v31 = vmul.f32 %v874_v24, %v522_v57  ;;  %v1499_v45 = vld [vmem:[%s3441_s4 + $0x448] sm:$0xff] }
 0x16e   :  { %v953_v58 = vpop.f32.mrf.mxu3 }
 0x16f   :  { %v954_v1 = vadd.f32 %v953_v58, %v934_v41  ;;  %v1490_v41 = vld [vmem:[%s3441_s4 + $0x400] sm:$0xff]  ;;  %v1472_v58 = vld [vmem:[%s3441_s4 + $0x370] sm:$0xff] }
 0x171   :  { %v1044_v17 = vmul.f32 %v954_v1, %v522_v57  ;;  %v1054_v62 = vmul.f32 %v954_v1, %v602_v63  ;;  %v1058_v33 = vmul.f32 %v1042_v25, %v954_v1  ;;  %v1069_v39 = vmul.f32 %v954_v1, %v442_v56  ;;  %v1460_v1 = vld [vmem:[%s3441_s4 + $0x310] sm:$0xff] }
 0x173   :  { %v1045_v7 = vadd.f32 %v1044_v17, %v1043_v5  ;;  %v1071_v42 = vsub.f32 %v1069_v39, %v1070_v31 }
 0x175   :  { %v1072_v49 = vmul.f32 %v1071_v42, %v1049_v29 }
 0x18a   :  { %v973_v2 = vpop.f32.mrf.mxu0 }
 0x18b   :  { %v993_v8 = vpop.f32.mrf.mxu1 }
 0x18c   :  { %v994_v11 = vadd.f32 %v993_v8, %v973_v2 }
 0x18d   :  { %v1013_v47 = vpop.f32.mrf.mxu2 }
 0x18e   :  { %v1014_v18 = vadd.f32 %v1013_v47, %v994_v11 }
 0x18f   :  { %v1033_v50 = vpop.f32.mrf.mxu3 }
 0x190   :  { %v1034_v20 = vadd.f32 %v1033_v50, %v1014_v18 }
 0x192   :  { %v1046_v21 = vmul.f32 %v1034_v20, %v602_v63  ;;  %v1053_v12 = vmul.f32 %v1034_v20, %v522_v57  ;;  %v1062_v16 = vmul.f32 %v1034_v20, %v442_v56  ;;  %v1066_v43 = vmul.f32 %v1042_v25, %v1034_v20 }
 0x194   :  { %v1047_v23 = vadd.f32 %v1046_v21, %v1045_v7  ;;  %v1055_v27 = vsub.f32 %v1053_v12, %v1054_v62  ;;  %v1063_v28 = vsub.f32 %v1061_v22, %v1062_v16 }
 0x196   :  { %v1048_v26 = vmul.f32 2.0, %v1047_v23  ;;  %v1064_v36 = vmul.f32 %v1063_v28, %v1049_v29  ;;  %v1056_v38 = vmul.f32 %v1055_v27, %v1049_v29 }
 0x198   :  { %v1059_v34 = vmul.f32 %v1048_v26, %v522_v57  ;;  %v1051_v9 = vmul.f32 %v1048_v26, %v442_v56  ;;  %v1067_v40 = vmul.f32 %v1048_v26, %v602_v63  ;;  %v1478_v56 = vld [vmem:[%s3441_s4 + $0x3a0] sm:$0xff]  ;;  %v1475_v57 = vld [vmem:[%s3441_s4 + $0x388] sm:$0xff] }
 0x199   :  { %v1463_v63 = vld [vmem:[%s3441_s4 + $0x328] sm:$0xff] }
 0x19a   :  { %v1060_v35 = vadd.f32 %v1059_v34, %v1058_v33  ;;  %v1052_v37 = vadd.f32 %v1051_v9, %v1050_v30  ;;  %v1068_v46 = vadd.f32 %v1067_v40, %v1066_v43 }
 0x19c   :  { %v1065_v13 = vadd.f32 %v1064_v36, %v1060_v35  ;;  %v1057_v60 = vadd.f32 %v1056_v38, %v1052_v37  ;;  %v1073_v52 = vadd.f32 %v1072_v49, %v1068_v46 }
 0x19e   :  { %1187 = vmatmul.f32.vlgmr.msrb.gmra.mxu0 %v1065_v13  ;;  %1207 = vmatmul.f32.vlgmr.msrb.gmra.mxu1 %v1065_v13 }
 0x19f   :  { %1227 = vmatmul.f32.vlgmr.msrb.gmra.mxu2 %v1065_v13  ;;  %1247 = vmatmul.f32.vlgmr.msrb.gmra.mxu3 %v1057_v60 }
 0x1a0   :  { %1380 = vmatpush.msrb.mxu0 %v1505_v32 }
 0x1a2   :  { %1381 = vmatpush.msrb.mxu0 %v1502_v44 }
 0x1a4   :  { %1382 = vmatpush.msrb.mxu0 %v1499_v45 }
 0x1a6   :  { %1383 = vmatpush.msrb.mxu0 %v1496_v48  ;;  %1287 = vmatmul.f32.vlgmr.msra.gmra.mxu1 %v1057_v60 }
 0x1a7   :  { %1267 = vmatmul.f32.vlgmr.msra.gmra.mxu0 %v1057_v60  ;;  %1356 = vmatmul.f32.vlgmr.msra.gmra.mxu2 %v1073_v52 }
 0x1a8   :  { %1376 = vmatmul.f32.vlgmr.msra.gmra.mxu3 %v1073_v52  ;;  %1384 = vmatpush.msrb.mxu0 %v1493_v6 }
 0x1aa   :  { %1385 = vmatpush.msrb.mxu0 %v1490_v41 }
 0x1ac   :  { %1386 = vmatpush.msrb.mxu0 %v1487_v53 }
 0x1ae   :  { %1387 = vmatpush.msrb.mxu0 %v1484_v54 }
 0x1b0   :  { %1388 = vmatpush.msrb.mxu0 %v1481_v55 }
 0x1b2   :  { %1389 = vmatpush.msrb.mxu0 %v1478_v56 }
 0x1b4   :  { %1390 = vmatpush.msrb.mxu0 %v1475_v57 }
 0x1b6   :  { %1391 = vmatpush.msrb.mxu0 %v1472_v58 }
 0x1b8   :  { %1392 = vmatpush.msrb.mxu0 %v1469_v59 }
 0x1ba   :  { %1393 = vmatpush.msrb.mxu0 %v1466_v61 }
 0x1bc   :  { %1394 = vmatpush.msrb.mxu0 %v1463_v63 }
 0x1be   :  { %1395 = vmatpush.msrb.mxu0 %v1460_v1 }
 0x1bf   :  { %1396 = vmatmul.f32.vlgmr.msrb.gmra.mxu0 %v1073_v52 }
 0x21b   :  { %v1188_v2 = vpop.f32.mrf.mxu0  ;;  %v1208_v10 = vpop.f32.mrf.mxu1 }
 0x222   :  { %v1228_v3 = vpop.f32.mrf.mxu2  ;;  %v1248_v4 = vpop.f32.mrf.mxu3 }
 0x223   :  { %v1249_v24 = vadd.f32 %v1248_v4, %v1188_v2  ;;  %v1288_v19 = vpop.f32.mrf.mxu1 }
 0x224   :  { %v1268_v8 = vpop.f32.mrf.mxu0  ;;  %v1289_v50 = vadd.f32 %v1288_v19, %v1228_v3 }
 0x225   :  { %v1269_v11 = vadd.f32 %v1268_v8, %v1208_v10 }
 0x22a   :  { %v1357_v47 = vpop.f32.mrf.mxu2 }
 0x22b   :  { %v1400_v15 = vadd.f32 %v1357_v47, %v1249_v24  ;;  %v1377_v17 = vpop.f32.mrf.mxu3 }
 0x22c   :  { %v1401_v18 = vadd.f32 %v1377_v17, %v1269_v11 }
 0x22d   :  { %1403 = vst [vmem:[%s3442_s5] sm:$0xff] %v1400_v15 }
 0x22e   :  { %1404 = vst [vmem:[%s3442_s5 + $0x8] sm:$0xff] %v1401_v18 }
 0x23c   :  { %v1397_v51 = vpop.f32.mrf.mxu0 }
 0x23d   :  { %v1402_v5 = vadd.f32 %v1397_v51, %v1289_v50 }
 0x23f   :  { %1405 = vst [vmem:[%s3442_s5 + $0x10] sm:$0xff] %v1402_v5 }

</bundles_post_ra>
